<compile_context>
chip_gen: v5e
topology: v5e:2x2
jax: 0.10.0
libtpu: 0.0.40
codegen_flags: <defaults>
</compile_context>

<pallas_src>
import functools

import jax
import jax.numpy as jnp
from jax.experimental import pallas as pl
from jax.experimental.pallas import tpu as pltpu


def _round_up(x, m):
    return ((x + m - 1) // m) * m


def _fused_embed_kernel(n_emb, n_pass, *refs):
    """One grid step over a row tile.

    refs layout (static, depends on which feature kinds exist):
        idx_ref   [TN, E]  int32  pre-offset embedding indices      (if n_emb)
        table_ref [Vp, Dp] f32    block-diagonal embedding table    (if n_emb)
        pv_ref    [TN, P]  f32    pass-through feature values       (if n_pass)
        sel_ref   [P,  Dp] f32    0/1 output-column selection       (if n_pass)
        out_ref   [TN, Dp] f32    lane-dense output slab (Dp % 128 == 0)
    """
    out_ref = refs[-1]
    pos = 0
    acc = None

    if n_emb:
        idx_ref, table_ref = refs[pos], refs[pos + 1]
        pos += 2
        tn = idx_ref.shape[0]
        v_pad = table_ref.shape[0]
        iota_v = jax.lax.broadcasted_iota(jnp.int32, (tn, v_pad), 1)
        idx = idx_ref[...]                       # [TN, E] already vocab-offset
        # Disjoint vocab ranges -> OR of per-feature compares, single cast.
        oh = idx[:, 0:1] == iota_v
        for e in range(1, n_emb):
            oh = jnp.logical_or(oh, idx[:, e:e + 1] == iota_v)
        onehot = oh.astype(jnp.float32)
        # Single MXU matmul writes every embedded column at its final offset.
        acc = jnp.dot(onehot, table_ref[...],
                      preferred_element_type=jnp.float32,
                      precision=jax.lax.Precision.HIGHEST)

    if n_pass:
        pv_ref, sel_ref = refs[pos], refs[pos + 1]
        pos += 2
        # Pass-through columns ride the MXU (free vector-extended slot)
        # instead of a per-feature VPU iota/where scatter.
        pv = jnp.dot(pv_ref[...], sel_ref[...],
                     preferred_element_type=jnp.float32,
                     precision=jax.lax.Precision.HIGHEST)
        acc = pv if acc is None else acc + pv

    out_ref[...] = acc


def fused_embedding(idx, table, pv, sel):
    """All features in one pallas_call.  Returns the lane-padded [N, D_pad] slab.

    idx:   [N, E] int32 pre-offset indices, or None
    table: [V_pad, D_pad] f32 block-diagonal table, or None
    pv:    [N, P] f32 pass-through values, or None
    sel:   [P, D_pad] f32 0/1 selection matrix, or None
    """
    n_emb = 0 if idx is None else idx.shape[1]
    n_pass = 0 if pv is None else pv.shape[1]
    assert n_emb or n_pass, "Embedding module with zero features"
    n = idx.shape[0] if idx is not None else pv.shape[0]
    d_pad = table.shape[1] if table is not None else sel.shape[1]
    v_pad = table.shape[0] if table is not None else 0

    try:
        vmem_cap = int(pltpu.get_tpu_info().vmem_capacity_bytes)
    except Exception:
        vmem_cap = 64 * 2**20  # conservative (v7x) fallback

    # Row tile: large to amortize the ~0.35us per-grid-step overhead, bounded
    # so the [TN, V_pad] one-hot stays within a per-generation budget
    # (4 MiB on v7x's 64 MiB VMEM, 8 MiB on v5e/v6e's 128 MiB).
    onehot_budget = (4 if vmem_cap <= 64 * 2**20 else 8) * 2**20
    if n_emb:
        max_tn = max(8, (onehot_budget // (v_pad * 4)) // 8 * 8)
    else:
        max_tn = 1024
    target_tn = 1024 if (n_emb == 0 or v_pad <= 2048) else 512
    if n <= target_tn and n <= max_tn:
        tn = n                       # single row block, no ragged block at all
    else:
        tn = min(target_tn, max_tn)  # multiple of 8, < n -> ragged last block

    grid = (pl.cdiv(n, tn),)         # no jnp.pad: Pallas masks the ragged tail

    in_specs = []
    args = []
    single_buf_table = False
    if n_emb:
        in_specs.append(pl.BlockSpec((tn, n_emb), lambda i: (i, 0)))   # idx tile
        table_bytes = v_pad * d_pad * 4
        if table_bytes > (1 << 20):
            # Constant index_map: double buffering buys nothing; single-buffer
            # large tables so big vocabularies keep TN large (matters on v7x).
            table_spec = pl.BlockSpec((v_pad, d_pad), lambda i: (0, 0),
                                      pipeline_mode=pl.Buffered(1))
            single_buf_table = True
        else:
            table_spec = pl.BlockSpec((v_pad, d_pad), lambda i: (0, 0))
        in_specs.append(table_spec)                                    # resident
        args += [idx, table]
    if n_pass:
        in_specs.append(pl.BlockSpec((tn, n_pass), lambda i: (i, 0)))  # pass vals
        in_specs.append(pl.BlockSpec((n_pass, d_pad), lambda i: (0, 0)))  # sel
        args += [pv, sel]

    # VMEM bookkeeping: double-buffered streaming tiles + resident constants +
    # in-kernel intermediates, capped below physical VMEM (v7x = 64 MiB).
    est_vmem = 3 * tn * d_pad * 4                       # out tiles (x2) + acc
    if n_emb:
        est_vmem += 2 * tn * n_emb * 4                  # idx tiles
        est_vmem += (1 if single_buf_table else 2) * v_pad * d_pad * 4
        est_vmem += 2 * tn * v_pad * 4                  # one-hot + iota
    if n_pass:
        est_vmem += 2 * tn * n_pass * 4 + 2 * n_pass * d_pad * 4
    vmem_limit = int(min(0.75 * vmem_cap, max(32 * 2**20, 2 * est_vmem)))

    kernel = functools.partial(_fused_embed_kernel, n_emb, n_pass)

    return pl.pallas_call(
        kernel,
        out_shape=jax.ShapeDtypeStruct((n, d_pad), jnp.float32),
        grid_spec=pltpu.PrefetchScalarGridSpec(
            num_scalar_prefetch=0,
            grid=grid,
            in_specs=in_specs,
            out_specs=pl.BlockSpec((tn, d_pad), lambda i: (i, 0)),
        ),
        compiler_params=pltpu.CompilerParams(
            dimension_semantics=("parallel",),
            vmem_limit_bytes=vmem_limit,
        ),
    )(*args)


class EmbeddingPallas:
    """JAX/Pallas port of the PyTorch `Embedding` module (fused single kernel)."""

    def __init__(self, sizes, dim_embeddings, key):
        self.sizes = tuple(sizes)
        self.dims = tuple(dim_embeddings)
        self.tables = []    # per-feature f32 tables (None = passthrough), for reference
        emb_cols, v_offsets, placements = [], [], []
        pass_cols, pass_out_cols = [], []
        v_off = 0
        col = 0
        for i, (size, dim) in enumerate(zip(self.sizes, self.dims)):
            if size > 10:
                key, sub = jax.random.split(key)
                # nn.Embedding default init: N(0, 1)
                t = jax.random.normal(sub, (size, dim), dtype=jnp.float32)
                self.tables.append(t)
                emb_cols.append(i)
                v_offsets.append(v_off)
                placements.append((v_off, col, t))
                v_off += size
                col += dim
            else:
                self.tables.append(None)
                pass_cols.append(i)
                pass_out_cols.append(col)
                col += 1
        self.d_total = col

        # Lane-dense output width -> full-width vst in the kernel.
        self.d_pad = max(128, _round_up(max(self.d_total, 1), 128))

        if emb_cols:
            # Combined block-diagonal table: table_i occupies rows
            # [v_off_i : v_off_i + V_i] and output columns [col_i : col_i + D_i].
            # Kept in f32 so the lookup is bit-exact vs the f32 nn.Embedding weights.
            self.v_pad = max(128, _round_up(v_off, 128))
            combined = jnp.zeros((self.v_pad, self.d_pad), dtype=jnp.float32)
            for v0, c0, t in placements:
                combined = combined.at[v0:v0 + t.shape[0],
                                       c0:c0 + t.shape[1]].set(t)
            self.combined_table = combined
            self.v_offsets = jnp.asarray(v_offsets, dtype=jnp.int32)
            self._emb_cols_arr = jnp.asarray(emb_cols, dtype=jnp.int32)
        else:
            self.combined_table = None
            self.v_offsets = None
            self._emb_cols_arr = None

        if pass_cols:
            sel = jnp.zeros((len(pass_cols), self.d_pad), dtype=jnp.float32)
            for p, c in enumerate(pass_out_cols):
                sel = sel.at[p, c].set(1.0)
            self.pass_sel = sel
            self._pass_cols_arr = jnp.asarray(pass_cols, dtype=jnp.int32)
        else:
            self.pass_sel = None
            self._pass_cols_arr = None

    def __call__(self, x, *, return_padded=False):
        # x: [N, F] int32 feature matrix.
        # TODO(synk): for very large vocabularies (resident table > ~24 MiB on
        # v7x / ~56 MiB on v5e/v6e) switch to a scalar-prefetch DMA row-gather
        # path instead of the one-hot matmul.
        x = x.astype(jnp.int32)
        idx = None
        pv = None
        if self._emb_cols_arr is not None:
            # Pre-offset indices so the kernel never slices lane-sparse x
            # columns or adds vocab offsets per feature.
            idx = jnp.take(x, self._emb_cols_arr, axis=1) + self.v_offsets[None, :]
        if self._pass_cols_arr is not None:
            pv = jnp.take(x, self._pass_cols_arr, axis=1).astype(jnp.float32)

        out = fused_embedding(idx, self.combined_table, pv, self.pass_sel)
        if return_padded:
            # Lane-padded [N, d_pad] slab (zero tail columns): lets a consumer
            # fuse/ignore the slice instead of a separate HBM round trip.
            return out
        return out[:, :self.d_total]


def _reference(x, tables):
    """Pure-JAX reference (jnp.take) for correctness checking."""
    pieces = []
    for i, table in enumerate(tables):
        if table is None:
            pieces.append(x[:, i].astype(jnp.float32)[:, None])
        else:
            pieces.append(jnp.take(table, x[:, i], axis=0))
    return jnp.concatenate(pieces, axis=-1)


if __name__ == "__main__":
    key = jax.random.PRNGKey(0)

    # Feature vocab sizes and their embedding dims (size <= 10 -> passthrough).
    sizes = (16, 5, 32, 3)
    dim_embeddings = (8, 1, 16, 1)
    n_rows = 200

    key, k_mod, k_x = jax.random.split(key, 3)
    module = EmbeddingPallas(sizes, dim_embeddings, k_mod)

    # Integer feature matrix x: [N, F], each column within its vocab.
    cols = []
    for size in sizes:
        k_x, sub = jax.random.split(k_x)
        cols.append(jax.random.randint(sub, (n_rows,), 0, size, dtype=jnp.int32))
    x = jnp.stack(cols, axis=-1)  # [200, 4] int32

    out = jax.block_until_ready(module(x))

    ref = _reference(x, module.tables)
    expected_dim = sum(d if s > 10 else 1 for s, d in zip(sizes, dim_embeddings))
    assert out.shape == (n_rows, expected_dim), out.shape
    assert out.dtype == jnp.float32
    assert jnp.allclose(out, ref, atol=1e-5), float(jnp.abs(out - ref).max())

    print("KERNEL_OK")
</pallas_src>

<mosaic_0001>
module attributes {stable_mosaic.version = 11 : i64} {
  func.func @_fused_embed_kernel(%arg0: i32, %arg1: memref<200x2xi32, #tpu.memory_space<vmem>>, %arg2: memref<128x128xf32, #tpu.memory_space<vmem>>, %arg3: memref<200x2xf32, #tpu.memory_space<vmem>>, %arg4: memref<2x128xf32, #tpu.memory_space<vmem>>, %arg5: memref<200x128xf32, #tpu.memory_space<vmem>>) attributes {dimension_semantics = [#tpu.dimension_semantics<parallel>], iteration_bounds = array<i64: 1>, scalar_prefetch = 0 : i64, scratch_operands = 0 : i64, tpu.core_type = #tpu.core_type<tc>, window_params = [{transform_indices = @transform_0, window_bounds = array<i64: 200, 2>}, {pipeline_mode = #tpu.pipeline_mode<synchronous>, transform_indices = @transform_1, window_bounds = array<i64: 128, 128>}, {transform_indices = @transform_2, window_bounds = array<i64: 200, 2>}, {pipeline_mode = #tpu.pipeline_mode<synchronous>, transform_indices = @transform_3, window_bounds = array<i64: 2, 128>}, {transform_indices = @transform_4, window_bounds = array<i64: 200, 128>}]} {
    %0 = tpu.iota {dimensions = array<i32: 1>} : vector<200x128xi32>
    %c0 = arith.constant 0 : index
    %c0_0 = arith.constant 0 : index
    %1 = vector.load %arg1[%c0, %c0_0] : memref<200x2xi32, #tpu.memory_space<vmem>>, vector<200x2xi32>
    %2 = vector.extract_strided_slice %1 {offsets = [0, 0], sizes = [200, 1], strides = [1, 1]} : vector<200x2xi32> to vector<200x1xi32>
    %3 = vector.broadcast %2 : vector<200x1xi32> to vector<200x128xi32>
    %4 = arith.cmpi eq, %3, %0 : vector<200x128xi32>
    %5 = vector.extract_strided_slice %1 {offsets = [0, 1], sizes = [200, 1], strides = [1, 1]} : vector<200x2xi32> to vector<200x1xi32>
    %6 = vector.broadcast %5 : vector<200x1xi32> to vector<200x128xi32>
    %7 = arith.cmpi eq, %6, %0 : vector<200x128xi32>
    %8 = arith.ori %4, %7 : vector<200x128xi1>
    %9 = arith.extui %8 : vector<200x128xi1> to vector<200x128xi32>
    %10 = arith.sitofp %9 : vector<200x128xi32> to vector<200x128xf32>
    %c0_1 = arith.constant 0 : index
    %c0_2 = arith.constant 0 : index
    %11 = vector.load %arg2[%c0_1, %c0_2] : memref<128x128xf32, #tpu.memory_space<vmem>>, vector<128x128xf32>
    %cst = arith.constant dense<0.000000e+00> : vector<200x128xf32>
    %12 = tpu.matmul %10, %11, %cst {dimension_numbers = #tpu.dot_dimension_numbers<[1], [0], [0], [1], [0, 0, 1, 1], [], []>, precision = #tpu.contract_precision<fp32>} : vector<200x128xf32>, vector<128x128xf32>, vector<200x128xf32> -> vector<200x128xf32>
    %c0_3 = arith.constant 0 : index
    %c0_4 = arith.constant 0 : index
    %13 = vector.load %arg3[%c0_3, %c0_4] : memref<200x2xf32, #tpu.memory_space<vmem>>, vector<200x2xf32>
    %c0_5 = arith.constant 0 : index
    %c0_6 = arith.constant 0 : index
    %14 = vector.load %arg4[%c0_5, %c0_6] : memref<2x128xf32, #tpu.memory_space<vmem>>, vector<2x128xf32>
    %cst_7 = arith.constant dense<0.000000e+00> : vector<200x128xf32>
    %15 = tpu.matmul %13, %14, %cst_7 {dimension_numbers = #tpu.dot_dimension_numbers<[1], [0], [0], [1], [0, 0, 1, 1], [], []>, precision = #tpu.contract_precision<fp32>} : vector<200x2xf32>, vector<2x128xf32>, vector<200x128xf32> -> vector<200x128xf32>
    %16 = arith.addf %12, %15 : vector<200x128xf32>
    %c0_8 = arith.constant 0 : index
    %c0_9 = arith.constant 0 : index
    %17 = vector.load %arg5[%c0_8, %c0_9] : memref<200x128xf32, #tpu.memory_space<vmem>>, vector<200x128xf32>
    tpu.vector_store %arg5[%c0_8, %c0_9], %16 {strides = array<i32>} : memref<200x128xf32, #tpu.memory_space<vmem>>, vector<200x128xf32>,
    return
  }
  func.func @transform_0(%arg0: i32) -> (i32, i32) {
    %c0_i32 = arith.constant 0 : i32
    %c0_i32_0 = arith.constant 0 : i32
    return %arg0, %c0_i32 : i32, i32
  }
  func.func @transform_1(%arg0: i32) -> (i32, i32) {
    %c0_i32 = arith.constant 0 : i32
    %c0_i32_0 = arith.constant 0 : i32
    %c0_i32_1 = arith.constant 0 : i32
    return %c0_i32, %c0_i32_0 : i32, i32
  }
  func.func @transform_2(%arg0: i32) -> (i32, i32) {
    %c0_i32 = arith.constant 0 : i32
    %c0_i32_0 = arith.constant 0 : i32
    return %arg0, %c0_i32 : i32, i32
  }
  func.func @transform_3(%arg0: i32) -> (i32, i32) {
    %c0_i32 = arith.constant 0 : i32
    %c0_i32_0 = arith.constant 0 : i32
    %c0_i32_1 = arith.constant 0 : i32
    return %c0_i32, %c0_i32_0 : i32, i32
  }
  func.func @transform_4(%arg0: i32) -> (i32, i32) {
    %c0_i32 = arith.constant 0 : i32
    %c0_i32_0 = arith.constant 0 : i32
    return %arg0, %c0_i32 : i32, i32
  }
}

</mosaic_0001>

<bundles_post_ra>
// kernel: tpu_custom_call.1
= control target key start
LH: loop header
LB: loop body
LE: loop exit
PB: predicated region body
PF: predicated region fallthrough
CT: control target
= control target key end

     0   :  { %vm438_vm0 = vcmask 1041408   ;;  %vm362_vm1 = vcmask 15360   ;;  %s4163_s0 = inlined_call_operand.vmem [shape: s32[200,2], index: 0, kind: input, shape index: {}]   ;;  %s4164_s1 = inlined_call_operand.vmem [shape: f32[128,128], index: 1, kind: input, shape index: {}]   ;;  %s4165_s2 = inlined_call_operand.vmem [shape: f32[200,2], index: 2, kind: input, shape index: {}]   ;;  %s4166_s3 = inlined_call_operand.vmem [shape: f32[2,128], index: 3, kind: input, shape index: {}]   ;;  %s4167_s4 = inlined_call_operand.hbm [shape: f32[200,128], index: 4, kind: output, shape index: {}]  }
   0x1   :  { %v361_v0 = vld [vmem:[%s4166_s3] sm:$0x3]  ;;  %v335_v2 = vld [vmem:[%s4164_s1 + $0x78] sm:$0xff]  ;;  %v337_v6 = vld [vmem:[%s4165_s2 + $0x8] sm:$0xff] }
   0x2   :  { %v336_v1 = vld [vmem:[%s4165_s2] sm:$0xff]  ;;  %v440_v3 = vsel %vm438_vm0, %v361_v0, 0  ;;  %v2669_v5 = vand.u32 4294901760, %v335_v2  ;;  %v338_v7 = vld [vmem:[%s4165_s2 + $0x10] sm:$0xff]  ;;  %v367_v11 = vsel %vm362_vm1, %v337_v6, 0  ;;  %v333_v12 = vld [vmem:[%s4164_s1 + $0x68] sm:$0xff] }
   0x3   :  { %v364_v4 = vsel %vm362_vm1, %v336_v1, 0  ;;  %v334_v8 = vld [vmem:[%s4164_s1 + $0x70] sm:$0xff]  ;;  %v457_v9 = vand.u32 4294901760, %v440_v3  ;;  %v2689_v14 = vand.u32 4294901760, %v367_v11 }
   0x4   :  { %v2680_v10 = vand.u32 4294901760, %v364_v4  ;;  %v2687_v13 = vsub.f32 %v335_v2, %v2669_v5  ;;  %v2691_v15 = vand.u32 4294901760, %v334_v8 }
   0x5   :  { %9 = vsyncpa [#allocation3], 0  ;;  %v676_v16 = vsub.f32 %v440_v3, %v457_v9  ;;  %942 = vmatpush.msra.mxu3 %v457_v9  ;;  %458 = vmatpush.msra.mxu0 %v457_v9  ;;  %v370_v18 = vsel %vm362_vm1, %v338_v7, 0  ;;  %v2695_v19 = vand.u32 4294901760, %v333_v12  ;;  %v468_v21 = vsub.f32 %v367_v11, %v2689_v14  ;;  %v339_v37 = vld [vmem:[%s4165_s2 + $0x18] sm:$0xff]  ;;  %v332_v47 = vld [vmem:[%s4164_s1 + $0x60] sm:$0xff] }
   0x6   :  { %v460_v17 = vsub.f32 %v364_v4, %v2680_v10  ;;  %v4179_v20 = vand.u32 4294901760, %v2687_v13  ;;  %v2700_v22 = vsub.f32 %v334_v8, %v2691_v15  ;;  %v2708_v27 = vand.u32 4294901760, %v370_v18  ;;  %v340_v49 = vld [vmem:[%s4165_s2 + $0x20] sm:$0xff]  ;;  %v341_v60 = vld [vmem:[%s4165_s2 + $0x28] sm:$0xff]  ;;  %v331_v63 = vld [vmem:[%s4164_s1 + $0x58] sm:$0xff]  ;;  %s2448_s15 = sshll.u32 %s4167_s4, 4  ;;  %s2449_s15 = int_to_ptr.hbm [resolvable:$true] %s2448_s15 }
   0x7   :  { %799 = vmatpush.msra.mxu2 %v676_v16  ;;  %v677_v24 = vand.u32 4294901760, %v676_v16  ;;  %v2703_v25 = vsub.f32 %v333_v12, %v2695_v19  ;;  %v469_v31 = vand.u32 4294901760, %v468_v21  ;;  %v373_v43 = vsel %vm362_vm1, %v339_v37, 0  ;;  %v20_v4 = vld [vmem:[%s4163_s0] sm:$0xff]  ;;  %v342_v11 = vld [vmem:[%s4165_s2 + $0x30] sm:$0xff]  ;;  %s2632_s16 = smov 128  }
   0x8   :  { %v461_v23 = vand.u32 4294901760, %v460_v17  ;;  %802 = vmatmul.f32.vlgmr.msra.gmra.mxu2 %v460_v17  ;;  %v1568_v26 = vsub.f32 %v2687_v13, %v4179_v20  ;;  %v4178_v28 = vand.u32 4294901760, %v2700_v22  ;;  %v476_v41 = vsub.f32 %v370_v18, %v2708_v27  ;;  %s2633_s17 = smov 8  }
   0x9   :  { %1333 = vmatpush.msrb.mxu2 %v2669_v5  ;;  %v678_v30 = vsub.f32 %v676_v16, %v677_v24  ;;  %v4177_v32 = vand.u32 4294901760, %v2703_v25  ;;  %1112 = vmatpush.msrb.mxu0 %v677_v24  ;;  %v470_v40 = vsub.f32 %v468_v21, %v469_v31  ;;  %v2727_v46 = vand.u32 4294901760, %v373_v43 }
   0xa   :  { %946 = vmatmul.f32.vlgmr.msra.gmra.mxu3 %v461_v23  ;;  %v462_v29 = vsub.f32 %v460_v17, %v461_v23  ;;  %v1569_v33 = vand.u32 4294901760, %v1568_v26  ;;  %v1574_v34 = vsub.f32 %v2700_v22, %v4178_v28  ;;  %v477_v45 = vand.u32 4294901760, %v476_v41  ;;  %v21_v23 = vld [vmem:[%s4163_s0 + $0x8] sm:$0xff] }
   0xb   :  { %v679_v36 = vand.u32 4294901760, %v678_v30  ;;  %1335 = vmatpush.msrb.mxu2 %v2691_v15  ;;  %v1580_v38 = vsub.f32 %v2703_v25, %v4177_v32  ;;  %v471_v44 = vand.u32 4294901760, %v470_v40  ;;  %v2733_v48 = vand.u32 4294901760, %v332_v47  ;;  %v330_v30 = vld [vmem:[%s4164_s1 + $0x50] sm:$0xff] }
   0xc   :  { %v463_v35 = vand.u32 4294901760, %v462_v29  ;;  %1570 = vmatpush.msrb.mxu3 %v1569_v33  ;;  %v1575_v39 = vand.u32 4294901760, %v1574_v34  ;;  %v478_v51 = vsub.f32 %v476_v41, %v477_v45  ;;  %v484_v52 = vsub.f32 %v373_v43, %v2727_v46  ;;  %v343_v34 = vld [vmem:[%s4165_s2 + $0x38] sm:$0xff] }
   0xd   :  { %680 = vmatpush.msra.mxu1 %v679_v36  ;;  %v1581_v42 = vand.u32 4294901760, %v1580_v38  ;;  %1337 = vmatpush.msrb.mxu2 %v2695_v19  ;;  %v2742_v50 = vsub.f32 %v332_v47, %v2733_v48  ;;  %v376_v53 = vsel %vm362_vm1, %v340_v49, 0  ;;  %v379_v0 = vsel %vm362_vm1, %v341_v60, 0  ;;  %v345_v60 = vld [vmem:[%s4165_s2 + $0x48] sm:$0xff] }
   0xe   :  { %464 = vmatmul.f32.vlgmr.msra.gmra.mxu0 %v463_v35  ;;  %682 = vmatmul.f32.vlgmr.msra.gmra.mxu1 %v2680_v10  ;;  %v479_v56 = vand.u32 4294901760, %v478_v51  ;;  %v485_v57 = vand.u32 4294901760, %v484_v52  ;;  %v2755_v58 = vand.u32 4294901760, %v376_v53  ;;  %v2767_v1 = vand.u32 4294901760, %v331_v63 }
   0xf   :  { %1576 = vmatpush.msrb.mxu3 %v1575_v39  ;;  %1230 = vmatpush.msrb.mxu1 %v457_v9  ;;  %v4176_v54 = vand.u32 4294901760, %v2742_v50  ;;  %v4183_v3 = vmov 0   ;;  %v2776_v8 = vand.u32 4294901760, %v379_v0  ;;  %v382_v18 = vsel %vm362_vm1, %v342_v11, 0 }
  0x10   :  { %807 = vmatmul.f32.gmra.mxu2 %v468_v21  ;;  %1764 = vmatpush.msra.mxu0 %v2687_v13  ;;  %v486_v61 = vsub.f32 %v484_v52, %v485_v57  ;;  %v492_v62 = vsub.f32 %v376_v53, %v2755_v58  ;;  %v2770_v2 = vsub.f32 %v331_v63, %v2767_v1  ;;  %v2796_v29 = vand.u32 4294901760, %v382_v18 }
  0x11   :  { %1582 = vmatpush.msrb.mxu3 %v1581_v42  ;;  %1937 = vmatpush.msra.mxu1 %v2669_v5  ;;  %v1586_v55 = vsub.f32 %v2742_v50, %v4176_v54  ;;  %v500_v17 = vsub.f32 %v379_v0, %v2776_v8  ;;  %v2802_v33 = vand.u32 4294901760, %v330_v30  ;;  %v385_v38 = vsel %vm362_vm1, %v343_v34, 0 }
  0x12   :  { %952 = vmatmul.f32.gmra.mxu3 %v469_v31  ;;  %1767 = vmatpush.msra.mxu0 %v2700_v22  ;;  %v487_v6 = vand.u32 4294901760, %v486_v61  ;;  %v493_v7 = vand.u32 4294901760, %v492_v62  ;;  %v4175_v9 = vand.u32 4294901760, %v2770_v2  ;;  %v4180_v31 = vmov 1  }
  0x13   :  { %1339 = vmatpush.msrb.mxu2 %v2733_v48  ;;  %1939 = vmatpush.msra.mxu1 %v2691_v15  ;;  %v1587_v59 = vand.u32 4294901760, %v1586_v55  ;;  %v501_v26 = vand.u32 4294901760, %v500_v17  ;;  %v2809_v35 = vsub.f32 %v330_v30, %v2802_v33  ;;  %v508_v37 = vsub.f32 %v382_v18, %v2796_v29 }
  0x14   :  { %1770 = vmatpush.msra.mxu0 %v2703_v25  ;;  %2567 = vset.pattern.permute.xlu0 %v4183_v3  ;;  %v1592_v12 = vsub.f32 %v2770_v2, %v4175_v9  ;;  %v494_v16 = vsub.f32 %v492_v62, %v493_v7  ;;  %v2820_v43 = vand.u32 4294901760, %v385_v38 }
  0x15   :  { %1941 = vmatpush.msra.mxu1 %v2695_v19  ;;  %1588 = vmatpush.msrb.mxu3 %v1587_v59  ;;  %v502_v36 = vsub.f32 %v500_v17, %v501_v26  ;;  %v4174_v39 = vand.u32 4294901760, %v2809_v35  ;;  %v509_v42 = vand.u32 4294901760, %v508_v37 }
  0x16   :  { %472 = vmatmul.f32.gmra.mxu0 %v471_v44  ;;  %686 = vmatmul.f32.gmra.mxu1 %v2689_v14  ;;  %v1593_v21 = vand.u32 4294901760, %v1592_v12  ;;  %v495_v24 = vand.u32 4294901760, %v494_v16  ;;  %v516_v49 = vsub.f32 %v385_v38, %v2820_v43  ;;  %v2859_v16 = vld [vmem:[%s4163_s0 + $0x18] sm:$0xff] }
  0x17   :  { %1773 = vmatpush.msra.mxu0 %v2742_v50  ;;  %1943 = vmatpush.msra.mxu1 %v2733_v48  ;;  %v1598_v40 = vsub.f32 %v2809_v35, %v4174_v39  ;;  %v510_v47 = vsub.f32 %v508_v37, %v509_v42 }
  0x18   :  { %812 = vmatmul.f32.gmra.mxu2 %v476_v41  ;;  %46 = vperm.xlu0 %2567, %v20_v4   ;;  %v503_v41 = vand.u32 4294901760, %v502_v36  ;;  %v22_v36 = vld [vmem:[%s4163_s0 + $0x10] sm:$0xff] }
  0x19   :  { %1341 = vmatpush.msrb.mxu2 %v2767_v1  ;;  %2569 = vset.pattern.permute.xlu1 %v4183_v3  ;;  %v1599_v44 = vand.u32 4294901760, %v1598_v40  ;;  %v511_v55 = vand.u32 4294901760, %v510_v47 }
  0x1a   :  { %958 = vmatmul.f32.gmra.mxu3 %v477_v45  ;;  %2571 = vset.pattern.permute.xlu2 %v4183_v3  ;;  %v344_v45 = vld [vmem:[%s4165_s2 + $0x40] sm:$0xff] }
  0x1b   :  { %1776 = vmatpush.msra.mxu0 %v2770_v2  ;;  %1945 = vmatpush.msra.mxu1 %v2767_v1  ;;  %v388_v51 = vsel %vm362_vm1, %v344_v45, 0 }
  0x1c   :  { %1594 = vmatpush.msrb.mxu3 %v1593_v21  ;;  %49 = vperm.xlu1 %2569, %v21_v23   ;;  %v346_v21 = vld [vmem:[%s4165_s2 + $0x50] sm:$0xff] }
  0x1d   :  { %1343 = vmatpush.msrb.mxu2 %v2802_v33  ;;  %1947 = vmatpush.msra.mxu1 %v2802_v33  ;;  %v394_v30 = vsel %vm362_vm1, %v346_v21, 0 }
  0x1e   :  { %480 = vmatmul.f32.gmra.mxu0 %v479_v56  ;;  %690 = vmatmul.f32.gmra.mxu1 %v2708_v27  ;;  %v517_v56 = vand.u32 4294901760, %v516_v49  ;;  %v2883_v40 = vand.u32 4294901760, %v394_v30 }
  0x1f   :  { %1779 = vmatpush.msra.mxu0 %v2809_v35  ;;  %1600 = vmatpush.msrb.mxu3 %v1599_v44  ;;  %v347_v44 = vld [vmem:[%s4165_s2 + $0x58] sm:$0xff] }
  0x20   :  { %817 = vmatmul.f32.gmra.mxu2 %v484_v52  ;;  %2568 = vset.pattern.permute.xlu0 %v4180_v31  ;;  %v329_v52 = vld [vmem:[%s4164_s1 + $0x48] sm:$0xff]  ;;  %4299 = vst [vmem:[#allocation6_spill] sm:$0xff] %v2883_v40 }
  0x21   :  { %146 = vperm.xlu0 %2568, %v20_v4   ;;  %v2833_v53 = vand.u32 4294901760, %v329_v52  ;;  %v391_v4 = vsel %vm362_vm1, %v345_v60, 0  ;;  %52 = vperm.xlu2 %2571, %v22_v36  }
  0x22   :  { %964 = vmatmul.f32.gmra.mxu3 %v485_v57  ;;  %v2835_v57 = vand.u32 4294901760, %v388_v51  ;;  %v2854_v12 = vand.u32 4294901760, %v391_v4 }
  0x23   :  { %1345 = vmatpush.msrb.mxu2 %v2833_v53  ;;  %v2839_v59 = vsub.f32 %v329_v52, %v2833_v53  ;;  %1949 = vmatpush.msra.mxu1 %v2833_v53  ;;  %v327_v52 = vld [vmem:[%s4164_s1 + $0x38] sm:$0xff] }
  0x24   :  { %2570 = vset.pattern.permute.xlu1 %v4180_v31  ;;  %v524_v63 = vsub.f32 %v388_v51, %v2835_v57  ;;  %4298 = vst [vmem:[#allocation5_spill] sm:$0xff] %v2854_v12  ;;  %v397_v51 = vsel %vm362_vm1, %v347_v44, 0 }
  0x25   :  { %149 = vperm.xlu1 %2570, %v21_v23   ;;  %v4172_v61 = vand.u32 4294901760, %v2839_v59  ;;  %1782 = vmatpush.msra.mxu0 %v2839_v59 }
  0x26   :  { %488 = vmatmul.f32.gmra.mxu0 %v487_v6  ;;  %694 = vmatmul.f32.gmra.mxu1 %v2727_v46  ;;  %v525_v11 = vand.u32 4294901760, %v524_v63 }
  0x27   :  { %v1604_v0 = vsub.f32 %v2839_v59, %v4172_v61 }
  0x28   :  { %822 = vmatmul.f32.gmra.mxu2 %v492_v62  ;;  %v518_v62 = vsub.f32 %v516_v49, %v517_v56  ;;  %v526_v23 = vsub.f32 %v524_v63, %v525_v11 }
  0x29   :  { %2574 = vset.pattern.permute.xlu0 %v4183_v3  ;;  %v1605_v6 = vand.u32 4294901760, %v1604_v0  ;;  %v25_v0 = vld [vmem:[%s4163_s0 + $0x28] sm:$0xff]  ;;  %2572 = vset.pattern.permute.xlu2 %v4180_v31 }
  0x2a   :  { %970 = vmatmul.f32.gmra.mxu3 %v493_v7  ;;  %v519_v7 = vand.u32 4294901760, %v518_v62  ;;  %v2903_v62 = vand.u32 4294901760, %v397_v51  ;;  %152 = vperm.xlu2 %2572, %v22_v36  }
  0x2b   :  { %1606 = vmatpush.msrb.mxu3 %v1605_v6 }
  0x2c   :  { %4300 = vst [vmem:[#allocation7_spill] sm:$0xff] %v2903_v62 }
  0x2d   :  { %2573 = vset.pattern.permute.xlu1 %v4183_v3 }
  0x2e   :  { %496 = vmatmul.f32.gmra.mxu0 %v495_v24  ;;  %698 = vmatmul.f32.gmra.mxu1 %v2755_v58  ;;  %v532_v24 = vsub.f32 %v391_v4, %v2854_v12  ;;  %v348_v4 = vld [vmem:[%s4165_s2 + $0x60] sm:$0xff] }
  0x2f   :  { %55 = vperm.xlu1 %2573, %v2859_v16   ;;  %v400_v21 = vsel %vm362_vm1, %v348_v4, 0 }
  0x30   :  { %827 = vmatmul.f32.gmra.mxu2 %v500_v17  ;;  %v328_v17 = vld [vmem:[%s4164_s1 + $0x40] sm:$0xff]  ;;  %v533_v38 = vand.u32 4294901760, %v532_v24  ;;  %v2926_v36 = vand.u32 4294901760, %v400_v21 }
  0x31   :  { %v2865_v18 = vand.u32 4294901760, %v328_v17 }
  0x32   :  { %976 = vmatmul.f32.gmra.mxu3 %v501_v26  ;;  %v534_v47 = vsub.f32 %v532_v24, %v533_v38  ;;  %4301 = vst [vmem:[#allocation8_spill] sm:$0xff] %v2926_v36  ;;  %155 = vperm.xlu2 %2572, %v2859_v16  }
  0x33   :  { %1347 = vmatpush.msrb.mxu2 %v2865_v18  ;;  %1951 = vmatpush.msra.mxu1 %v2865_v18  ;;  %v2874_v26 = vsub.f32 %v328_v17, %v2865_v18 }
  0x35   :  { %v4171_v34 = vand.u32 4294901760, %v2874_v26  ;;  %1785 = vmatpush.msra.mxu0 %v2874_v26 }
  0x36   :  { %504 = vmatmul.f32.gmra.mxu0 %v503_v41  ;;  %702 = vmatmul.f32.gmra.mxu1 %v2776_v8 }
  0x37   :  { %v1610_v41 = vsub.f32 %v2874_v26, %v4171_v34  ;;  %2575 = vset.pattern.permute.xlu1 %v4180_v31 }
  0x38   :  { %832 = vmatmul.f32.gmra.mxu2 %v508_v37  ;;  %v527_v37 = vand.u32 4294901760, %v526_v23 }
  0x39   :  { %v1611_v45 = vand.u32 4294901760, %v1610_v41 }
  0x3a   :  { %982 = vmatmul.f32.gmra.mxu3 %v509_v42  ;;  %v24_v42 = vld [vmem:[%s4163_s0 + $0x20] sm:$0xff]  ;;  %2576 = vset.pattern.permute.xlu2 %v4183_v3 }
  0x3b   :  { %58 = vperm.xlu0 %2574, %v24_v42   ;;  %158 = vperm.xlu1 %2575, %v24_v42   ;;  %v349_v42 = vld [vmem:[%s4165_s2 + $0x68] sm:$0xff] }
  0x3c   :  { %1612 = vmatpush.msrb.mxu3 %v1611_v45  ;;  %v556_v45 = vsub.f32 %v400_v21, %v2926_v36  ;;  %61 = vperm.xlu2 %2576, %v25_v0  }
  0x3e   :  { %512 = vmatmul.f32.gmra.mxu0 %v511_v55  ;;  %706 = vmatmul.f32.gmra.mxu1 %v2796_v29  ;;  %v2901_v55 = vand.u32 4294901760, %v327_v52 }
  0x40   :  { %837 = vmatmul.f32.gmra.mxu2 %v516_v49  ;;  %v540_v49 = vsub.f32 %v394_v30, %v2883_v40  ;;  %1953 = vmatpush.msra.mxu1 %v2901_v55 }
  0x41   :  { %1349 = vmatpush.msrb.mxu2 %v2901_v55 }
  0x42   :  { %988 = vmatmul.f32.gmra.mxu3 %v517_v56  ;;  %v535_v56 = vand.u32 4294901760, %v534_v47  ;;  %v541_v60 = vand.u32 4294901760, %v540_v49  ;;  %v403_v47 = vsel %vm362_vm1, %v349_v42, 0 }
  0x43   :  { %2577 = vset.pattern.permute.xlu0 %v4180_v31  ;;  %161 = vperm.xlu1 %2575, %v25_v0  }
  0x46   :  { %520 = vmatmul.f32.gmra.mxu0 %v519_v7  ;;  %710 = vmatmul.f32.gmra.mxu1 %v2820_v43  ;;  %v542_v7 = vsub.f32 %v540_v49, %v541_v60 }
  0x48   :  { %842 = vmatmul.f32.gmra.mxu2 %v524_v63  ;;  %v2907_v63 = vsub.f32 %v327_v52, %v2901_v55  ;;  %v557_v52 = vand.u32 4294901760, %v556_v45 }
  0x4a   :  { %994 = vmatmul.f32.gmra.mxu3 %v525_v11  ;;  %v4170_v6 = vand.u32 4294901760, %v2907_v63  ;;  %1788 = vmatpush.msra.mxu0 %v2907_v63  ;;  %v548_v11 = vsub.f32 %v397_v51, %v2903_v62 }
  0x4b   :  { %2578 = vset.pattern.permute.xlu1 %v4183_v3 }
  0x4c   :  { %v1616_v17 = vsub.f32 %v2907_v63, %v4170_v6  ;;  %v549_v30 = vand.u32 4294901760, %v548_v11 }
  0x4e   :  { %528 = vmatmul.f32.gmra.mxu0 %v527_v37  ;;  %714 = vmatmul.f32.gmra.mxu1 %v2835_v57  ;;  %v1617_v23 = vand.u32 4294901760, %v1616_v17  ;;  %v26_v37 = vld [vmem:[%s4163_s0 + $0x30] sm:$0xff]  ;;  %v550_v44 = vsub.f32 %v548_v11, %v549_v30  ;;  %v558_v17 = vsub.f32 %v556_v45, %v557_v52 }
  0x4f   :  { %164 = vperm.xlu0 %2577, %v26_v37   ;;  %64 = vperm.xlu2 %2576, %v26_v37  }
  0x50   :  { %847 = vmatmul.f32.gmra.mxu2 %v532_v24  ;;  %v543_v24 = vand.u32 4294901760, %v542_v7  ;;  %1618 = vmatpush.msrb.mxu3 %v1617_v23  ;;  %v551_v51 = vand.u32 4294901760, %v550_v44  ;;  %v350_v7 = vld [vmem:[%s4165_s2 + $0x70] sm:$0xff]  ;;  %v28_v44 = vld [vmem:[%s4163_s0 + $0x40] sm:$0xff] }
  0x51   :  { %v406_v23 = vsel %vm362_vm1, %v350_v7, 0 }
  0x52   :  { %1000 = vmatmul.f32.gmra.mxu3 %v533_v38  ;;  %v326_v38 = vld [vmem:[%s4164_s1 + $0x30] sm:$0xff]  ;;  %v2970_v42 = vand.u32 4294901760, %v406_v23 }
  0x53   :  { %v2934_v41 = vand.u32 4294901760, %v326_v38 }
  0x54   :  { %4303 = vst [vmem:[#allocation10_spill] sm:$0xff] %v2970_v42 }
  0x55   :  { %1351 = vmatpush.msrb.mxu2 %v2934_v41  ;;  %1955 = vmatpush.msra.mxu1 %v2934_v41 }
  0x56   :  { %536 = vmatmul.f32.gmra.mxu0 %v535_v56  ;;  %718 = vmatmul.f32.gmra.mxu1 %v2854_v12  ;;  %v2951_v56 = vand.u32 4294901760, %v403_v47 }
  0x57   :  { %2580 = vset.pattern.permute.xlu0 %v4183_v3  ;;  %2579 = vset.pattern.permute.xlu2 %v4180_v31 }
  0x58   :  { %852 = vmatmul.f32.gmra.mxu2 %v540_v49  ;;  %v2947_v49 = vsub.f32 %v326_v38, %v2934_v41  ;;  %4302 = vst [vmem:[#allocation9_spill] sm:$0xff] %v2951_v56  ;;  %v564_v21 = vsub.f32 %v403_v47, %v2951_v56 }
  0x5a   :  { %1006 = vmatmul.f32.gmra.mxu3 %v541_v60  ;;  %v4169_v16 = vand.u32 4294901760, %v2947_v49  ;;  %1791 = vmatpush.msra.mxu0 %v2947_v49  ;;  %v27_v60 = vld [vmem:[%s4163_s0 + $0x38] sm:$0xff]  ;;  %v565_v38 = vand.u32 4294901760, %v564_v21 }
  0x5b   :  { %67 = vperm.xlu1 %2578, %v27_v60   ;;  %167 = vperm.xlu2 %2579, %v27_v60   ;;  %v30_v60 = vld [vmem:[%s4163_s0 + $0x50] sm:$0xff] }
  0x5c   :  { %v1622_v4 = vsub.f32 %v2947_v49, %v4169_v16 }
  0x5e   :  { %544 = vmatmul.f32.gmra.mxu0 %v543_v24  ;;  %722 = vmatmul.f32.gmra.mxu1 %v2883_v40  ;;  %v325_v24 = vld [vmem:[%s4164_s1 + $0x28] sm:$0xff] }
  0x5f   :  { %v2972_v0 = vand.u32 4294901760, %v325_v24 }
  0x60   :  { %857 = vmatmul.f32.gmra.mxu2 %v548_v11  ;;  %v1623_v11 = vand.u32 4294901760, %v1622_v4 }
  0x61   :  { %1353 = vmatpush.msrb.mxu2 %v2972_v0  ;;  %v2982_v47 = vsub.f32 %v325_v24, %v2972_v0  ;;  %1957 = vmatpush.msra.mxu1 %v2972_v0 }
  0x62   :  { %1012 = vmatmul.f32.gmra.mxu3 %v549_v30  ;;  %v559_v30 = vand.u32 4294901760, %v558_v17 }
  0x63   :  { %1624 = vmatpush.msrb.mxu3 %v1623_v11  ;;  %70 = vperm.xlu1 %2578, %v28_v44   ;;  %v4168_v4 = vand.u32 4294901760, %v2982_v47 }
  0x64   :  { %1794 = vmatpush.msra.mxu0 %v2982_v47  ;;  %170 = vperm.xlu2 %2579, %v28_v44   ;;  %v323_v44 = vld [vmem:[%s4164_s1 + $0x18] sm:$0xff] }
  0x65   :  { %v1628_v11 = vsub.f32 %v2982_v47, %v4168_v4  ;;  %v3041_v61 = vand.u32 4294901760, %v323_v44 }
  0x66   :  { %552 = vmatmul.f32.gmra.mxu0 %v551_v51  ;;  %726 = vmatmul.f32.gmra.mxu1 %v2903_v62  ;;  %v566_v51 = vsub.f32 %v564_v21, %v565_v38 }
  0x68   :  { %862 = vmatmul.f32.gmra.mxu2 %v556_v45  ;;  %v351_v45 = vld [vmem:[%s4165_s2 + $0x78] sm:$0xff]  ;;  %v567_v17 = vand.u32 4294901760, %v566_v51 }
  0x69   :  { %v409_v7 = vsel %vm362_vm1, %v351_v45, 0  ;;  %v352_v45 = vld [vmem:[%s4165_s2 + $0x80] sm:$0xff] }
  0x6a   :  { %1018 = vmatmul.f32.gmra.mxu3 %v557_v52  ;;  %v572_v52 = vsub.f32 %v406_v23, %v2970_v42  ;;  %v2993_v24 = vand.u32 4294901760, %v409_v7  ;;  %v29_v23 = vld [vmem:[%s4163_s0 + $0x48] sm:$0xff]  ;;  %v412_v51 = vsel %vm362_vm1, %v352_v45, 0 }
  0x6b   :  { %2581 = vset.pattern.permute.xlu1 %v4180_v31  ;;  %73 = vperm.xlu0 %2580, %v29_v23   ;;  %v3009_v16 = vand.u32 4294901760, %v412_v51 }
  0x6c   :  { %v573_v37 = vand.u32 4294901760, %v572_v52  ;;  %4304 = vst [vmem:[#allocation11_spill] sm:$0xff] %v2993_v24  ;;  %173 = vperm.xlu1 %2581, %v29_v23   ;;  %2582 = vset.pattern.permute.xlu2 %v4183_v3 }
  0x6d   :  { %4305 = vst [vmem:[#allocation12_spill] sm:$0xff] %v3009_v16  ;;  %76 = vperm.xlu2 %2582, %v30_v60  }
  0x6e   :  { %560 = vmatmul.f32.gmra.mxu0 %v559_v30  ;;  %730 = vmatmul.f32.gmra.mxu1 %v2926_v36  ;;  %v1629_v30 = vand.u32 4294901760, %v1628_v11  ;;  %v324_v11 = vld [vmem:[%s4164_s1 + $0x20] sm:$0xff] }
  0x6f   :  { %v3011_v23 = vand.u32 4294901760, %v324_v11 }
  0x70   :  { %867 = vmatmul.f32.gmra.mxu2 %v564_v21  ;;  %1630 = vmatpush.msrb.mxu3 %v1629_v30  ;;  %v574_v21 = vsub.f32 %v572_v52, %v573_v37 }
  0x71   :  { %1355 = vmatpush.msrb.mxu2 %v3011_v23  ;;  %1959 = vmatpush.msra.mxu1 %v3011_v23 }
  0x72   :  { %1024 = vmatmul.f32.gmra.mxu3 %v565_v38  ;;  %v580_v38 = vsub.f32 %v409_v7, %v2993_v24  ;;  %v575_v30 = vand.u32 4294901760, %v574_v21  ;;  %v353_v7 = vld [vmem:[%s4165_s2 + $0x88] sm:$0xff] }
  0x73   :  { %2583 = vset.pattern.permute.xlu0 %v4180_v31  ;;  %v415_v21 = vsel %vm362_vm1, %v353_v7, 0  ;;  %v31_v7 = vld [vmem:[%s4163_s0 + $0x58] sm:$0xff]  ;;  %1357 = vmatpush.msrb.mxu2 %v3041_v61 }
  0x74   :  { %v581_v4 = vand.u32 4294901760, %v580_v38  ;;  %176 = vperm.xlu1 %2581, %v30_v60   ;;  %v3033_v34 = vand.u32 4294901760, %v415_v21  ;;  %179 = vperm.xlu0 %2583, %v31_v7  }
  0x75   :  { %1961 = vmatpush.msra.mxu1 %v3041_v61  ;;  %79 = vperm.xlu2 %2582, %v31_v7  }
  0x76   :  { %568 = vmatmul.f32.gmra.mxu0 %v567_v17  ;;  %734 = vmatmul.f32.gmra.mxu1 %v2951_v56  ;;  %v582_v17 = vsub.f32 %v580_v38, %v581_v4  ;;  %4306 = vst [vmem:[#allocation13_spill] sm:$0xff] %v3033_v34 }
  0x78   :  { %872 = vmatmul.f32.gmra.mxu2 %v572_v52  ;;  %v3021_v52 = vsub.f32 %v324_v11, %v3011_v23  ;;  %v583_v6 = vand.u32 4294901760, %v582_v17  ;;  %v596_v17 = vsub.f32 %v415_v21, %v3033_v34  ;;  %v32_v21 = vld [vmem:[%s4163_s0 + $0x60] sm:$0xff] }
  0x7a   :  { %1030 = vmatmul.f32.gmra.mxu3 %v573_v37  ;;  %v588_v37 = vsub.f32 %v412_v51, %v3009_v16  ;;  %v4173_v45 = vand.u32 4294901760, %v3021_v52  ;;  %1797 = vmatpush.msra.mxu0 %v3021_v52  ;;  %v597_v39 = vand.u32 4294901760, %v596_v17 }
  0x7c   :  { %v1634_v11 = vsub.f32 %v3021_v52, %v4173_v45  ;;  %2584 = vset.pattern.permute.xlu1 %v4183_v3  ;;  %2586 = vset.pattern.permute.xlu0 %v4183_v3  ;;  %v598_v28 = vsub.f32 %v596_v17, %v597_v39 }
  0x7d   :  { %82 = vperm.xlu1 %2584, %v32_v21  }
  0x7e   :  { %576 = vmatmul.f32.gmra.mxu0 %v575_v30  ;;  %738 = vmatmul.f32.gmra.mxu1 %v2970_v42  ;;  %v589_v30 = vand.u32 4294901760, %v588_v37  ;;  %v1635_v51 = vand.u32 4294901760, %v1634_v11  ;;  %v4310_v42 = vmov 1  }
  0x7f   :  { %2585 = vset.pattern.permute.xlu2 %v4310_v42 }
  0x80   :  { %877 = vmatmul.f32.gmra.mxu2 %v580_v38  ;;  %1636 = vmatpush.msrb.mxu3 %v1635_v51  ;;  %v590_v38 = vsub.f32 %v588_v37, %v589_v30  ;;  %v3054_v51 = vsub.f32 %v323_v44, %v3041_v61 }
  0x81   :  { %182 = vperm.xlu2 %2585, %v32_v21   ;;  %v357_v21 = vld [vmem:[%s4165_s2 + $0xa8] sm:$0xff] }
  0x82   :  { %1036 = vmatmul.f32.gmra.mxu3 %v581_v4  ;;  %v354_v4 = vld [vmem:[%s4165_s2 + $0x90] sm:$0xff]  ;;  %v4182_v45 = vand.u32 4294901760, %v3054_v51  ;;  %1800 = vmatpush.msra.mxu0 %v3054_v51  ;;  %v427_v56 = vsel %vm362_vm1, %v357_v21, 0 }
  0x83   :  { %v418_v11 = vsel %vm362_vm1, %v354_v4, 0 }
  0x84   :  { %v3058_v9 = vand.u32 4294901760, %v418_v11  ;;  %v1640_v44 = vsub.f32 %v3054_v51, %v4182_v45 }
  0x86   :  { %584 = vmatmul.f32.gmra.mxu0 %v583_v6  ;;  %742 = vmatmul.f32.gmra.mxu1 %v2993_v24  ;;  %v591_v6 = vand.u32 4294901760, %v590_v38  ;;  %4307 = vst [vmem:[#allocation14_spill] sm:$0xff] %v3058_v9  ;;  %v1641_v32 = vand.u32 4294901760, %v1640_v44  ;;  %v604_v20 = vsub.f32 %v418_v11, %v3058_v9  ;;  %v599_v44 = vand.u32 4294901760, %v598_v28 }
  0x88   :  { %882 = vmatmul.f32.gmra.mxu2 %v588_v37  ;;  %1642 = vmatpush.msrb.mxu3 %v1641_v32 }
  0x8a   :  { %1042 = vmatmul.f32.gmra.mxu3 %v589_v30  ;;  %v355_v30 = vld [vmem:[%s4165_s2 + $0x98] sm:$0xff] }
  0x8b   :  { %v465_v54 = vpop.f32.mrf.mxu0  ;;  %v683_v60 = vpop.f32.mrf.mxu1  ;;  %v421_v45 = vsel %vm362_vm1, %v355_v30, 0 }
  0x8c   :  { %v803_v37 = vpop.f32.mrf.mxu2  ;;  %v684_v4 = vadd.f32 %v683_v60, %v465_v54  ;;  %v322_v54 = vld [vmem:[%s4164_s1 + $0x10] sm:$0xff]  ;;  %v3078_v60 = vand.u32 4294901760, %v421_v45 }
  0x8d   :  { %v947_v38 = vpop.f32.mrf.mxu3  ;;  %v3080_v11 = vand.u32 4294901760, %v322_v54 }
  0x8e   :  { %592 = vmatmul.f32.gmra.mxu0 %v591_v6  ;;  %v804_v31 = vadd.f32 %v803_v37, %v684_v4  ;;  %746 = vmatmul.f32.gmra.mxu1 %v3009_v16  ;;  %v605_v6 = vand.u32 4294901760, %v604_v20  ;;  %4309 = vst [vmem:[#allocation16_spill] sm:$0xff] %v3078_v60  ;;  %v33_v37 = vld [vmem:[%s4163_s0 + $0x68] sm:$0xff] }
  0x8f   :  { %85 = vperm.xlu1 %2584, %v33_v37   ;;  %1359 = vmatpush.msrb.mxu2 %v3080_v11  ;;  %v3090_v28 = vsub.f32 %v322_v54, %v3080_v11 }
  0x90   :  { %v3073_v3 = vadd.f32 %v947_v38, %v804_v31  ;;  %887 = vmatmul.f32.gmra.mxu2 %v596_v17  ;;  %v356_v17 = vld [vmem:[%s4165_s2 + $0xa0] sm:$0xff]  ;;  %1963 = vmatpush.msra.mxu1 %v3080_v11  ;;  %v606_v4 = vsub.f32 %v604_v20, %v605_v6  ;;  %v612_v38 = vsub.f32 %v421_v45, %v3078_v60 }
  0x91   :  { %v4191_v16 = vand.u32 4294901760, %v3090_v28  ;;  %v424_v24 = vsel %vm362_vm1, %v356_v17, 0  ;;  %1803 = vmatpush.msra.mxu0 %v3090_v28  ;;  %v321_v17 = vld [vmem:[%s4164_s1 + $0x8] sm:$0xff]  ;;  %185 = vperm.xlu2 %2585, %v33_v37  }
  0x92   :  { %4308 = vst [vmem:[#allocation15_spill] sm:$0xff] %v3073_v3  ;;  %1048 = vmatmul.f32.gmra.mxu3 %v597_v39  ;;  %v607_v45 = vand.u32 4294901760, %v606_v4 }
  0x93   :  { %v473_v32 = vpop.f32.mrf.mxu0  ;;  %v687_v31 = vpop.f32.mrf.mxu1  ;;  %v1646_v54 = vsub.f32 %v3090_v28, %v4191_v16 }
  0x94   :  { %v808_v7 = vpop.f32.mrf.mxu2  ;;  %v688_v39 = vadd.f32 %v687_v31, %v473_v32  ;;  %v3104_v31 = vand.u32 4294901760, %v424_v24 }
  0x95   :  { %v953_v30 = vpop.f32.mrf.mxu3 }
  0x96   :  { %600 = vmatmul.f32.gmra.mxu0 %v599_v44  ;;  %v809_v3 = vadd.f32 %v808_v7, %v688_v39  ;;  %750 = vmatmul.f32.gmra.mxu1 %v3033_v34  ;;  %v613_v44 = vand.u32 4294901760, %v612_v38  ;;  %v1647_v7 = vand.u32 4294901760, %v1646_v54  ;;  %v620_v34 = vsub.f32 %v424_v24, %v3104_v31 }
  0x97   :  { %2587 = vset.pattern.permute.xlu1 %v4310_v42  ;;  %v3128_v24 = vand.u32 4294901760, %v427_v56 }
  0x98   :  { %v3102_v32 = vadd.f32 %v953_v30, %v809_v3  ;;  %892 = vmatmul.f32.gmra.mxu2 %v604_v20  ;;  %v34_v3 = vld [vmem:[%s4163_s0 + $0x70] sm:$0xff]  ;;  %1648 = vmatpush.msrb.mxu3 %v1647_v7  ;;  %v614_v16 = vsub.f32 %v612_v38, %v613_v44 }
  0x99   :  { %188 = vperm.xlu1 %2587, %v34_v3   ;;  %88 = vperm.xlu0 %2586, %v34_v3   ;;  %v621_v3 = vand.u32 4294901760, %v620_v34 }
  0x9a   :  { %4311 = vst [vmem:[#allocation17_spill] sm:$0xff] %v3102_v32  ;;  %1054 = vmatmul.f32.gmra.mxu3 %v605_v6  ;;  %v3116_v6 = vand.u32 4294901760, %v321_v17 }
  0x9b   :  { %v481_v39 = vpop.f32.mrf.mxu0  ;;  %v691_v30 = vpop.f32.mrf.mxu1 }
  0x9c   :  { %v813_v20 = vpop.f32.mrf.mxu2  ;;  %v692_v4 = vadd.f32 %v691_v30, %v481_v39  ;;  %1361 = vmatpush.msrb.mxu2 %v3116_v6  ;;  %1965 = vmatpush.msra.mxu1 %v3116_v6  ;;  %v3126_v39 = vsub.f32 %v321_v17, %v3116_v6 }
  0x9d   :  { %v959_v54 = vpop.f32.mrf.mxu3 }
  0x9e   :  { %608 = vmatmul.f32.gmra.mxu0 %v607_v45  ;;  %v814_v32 = vadd.f32 %v813_v20, %v692_v4  ;;  %754 = vmatmul.f32.gmra.mxu1 %v3058_v9  ;;  %v615_v45 = vand.u32 4294901760, %v614_v16  ;;  %v358_v20 = vld [vmem:[%s4165_s2 + $0xb0] sm:$0xff]  ;;  %v4202_v21 = vand.u32 4294901760, %v3126_v39  ;;  %v622_v4 = vsub.f32 %v620_v34, %v621_v3 }
  0x9f   :  { %1806 = vmatpush.msra.mxu0 %v3126_v39  ;;  %v430_v9 = vsel %vm362_vm1, %v358_v20, 0 }
  0xa0   :  { %v3123_v7 = vadd.f32 %v959_v54, %v814_v32  ;;  %897 = vmatmul.f32.gmra.mxu2 %v612_v38  ;;  %v35_v38 = vld [vmem:[%s4163_s0 + $0x78] sm:$0xff]  ;;  %v1652_v17 = vsub.f32 %v3126_v39, %v4202_v21  ;;  %v628_v54 = vsub.f32 %v427_v56, %v3128_v24  ;;  %v3152_v21 = vand.u32 4294901760, %v430_v9 }
  0xa1   :  { %191 = vperm.xlu1 %2587, %v35_v38   ;;  %2589 = vset.pattern.permute.xlu0 %v4310_v42 }
  0xa2   :  { %4312 = vst [vmem:[#allocation18_spill] sm:$0xff] %v3123_v7  ;;  %1060 = vmatmul.f32.gmra.mxu3 %v613_v44  ;;  %v320_v7 = vld [vmem:[%s4164_s1] sm:$0xff]  ;;  %v629_v20 = vand.u32 4294901760, %v628_v54 }
  0xa3   :  { %v489_v30 = vpop.f32.mrf.mxu0  ;;  %v695_v32 = vpop.f32.mrf.mxu1 }
  0xa4   :  { %v818_v37 = vpop.f32.mrf.mxu2  ;;  %v696_v16 = vadd.f32 %v695_v32, %v489_v30  ;;  %v1653_v30 = vand.u32 4294901760, %v1652_v17  ;;  %v3148_v32 = vand.u32 4294901760, %v320_v7  ;;  %v630_v40 = vsub.f32 %v628_v54, %v629_v20 }
  0xa5   :  { %v965_v44 = vpop.f32.mrf.mxu3 }
  0xa6   :  { %616 = vmatmul.f32.gmra.mxu0 %v615_v45  ;;  %v819_v36 = vadd.f32 %v818_v37, %v696_v16  ;;  %758 = vmatmul.f32.gmra.mxu1 %v3078_v60  ;;  %v3155_v56 = vsub.f32 %v320_v7, %v3148_v32  ;;  %v623_v45 = vand.u32 4294901760, %v622_v4  ;;  %v36_v37 = vld [vmem:[%s4163_s0 + $0x80] sm:$0xff]  ;;  %v359_v7 = vld [vmem:[%s4165_s2 + $0xb8] sm:$0xff]  ;;  %v3169_v60 = vpop.permute.xlu0 %46 }
  0xa7   :  { %1654 = vmatpush.msrb.mxu3 %v1653_v30  ;;  %1363 = vmatpush.msrb.mxu2 %v3148_v32 }
  0xa8   :  { %v3150_v62 = vadd.f32 %v965_v44, %v819_v36  ;;  %902 = vmatmul.f32.gmra.mxu2 %v620_v34  ;;  %194 = vperm.xlu0 %2589, %v36_v37   ;;  %v4314_v34 = vand.u32 4294901760, %v2687_v13  ;;  %v636_v36 = vsub.f32 %v430_v9, %v3152_v21  ;;  %v4318_v9 = vand.u32 4294901760, %v2703_v25 }
  0xa9   :  { %1967 = vmatpush.msra.mxu1 %v3148_v32  ;;  %1809 = vmatpush.msra.mxu0 %v3155_v56 }
  0xaa   :  { %4313 = vst [vmem:[#allocation19_spill] sm:$0xff] %v3150_v62  ;;  %1066 = vmatmul.f32.gmra.mxu3 %v621_v3  ;;  %2122 = vmatpush.msra.mxu2 %v4314_v34  ;;  %v4315_v3 = vmov 0   ;;  %v4316_v62 = vand.u32 4294901760, %v3155_v56  ;;  %v4317_v34 = vand.u32 4294901760, %v2700_v22  ;;  %v637_v22 = vand.u32 4294901760, %v636_v36 }
  0xab   :  { %v497_v16 = vpop.f32.mrf.mxu0  ;;  %v699_v44 = vpop.f32.mrf.mxu1  ;;  %2590 = vset.pattern.permute.xlu1 %v4315_v3  ;;  %2588 = vset.pattern.permute.xlu2 %v4315_v3 }
  0xac   :  { %v823_v17 = vpop.f32.mrf.mxu2  ;;  %v700_v4 = vadd.f32 %v699_v44, %v497_v16  ;;  %v1658_v13 = vsub.f32 %v3155_v56, %v4316_v62  ;;  %91 = vperm.xlu2 %2588, %v35_v38   ;;  %2126 = vmatpush.msra.mxu2 %v4317_v34  ;;  %v433_v16 = vsel %vm362_vm1, %v359_v7, 0  ;;  %v18_v38 = vlaneseq }
  0xad   :  { %v971_v30 = vpop.f32.mrf.mxu3  ;;  %v3185_v34 = vand.u32 4294901760, %v433_v16  ;;  %v4319_v7 = vand.u32 4294901760, %v2742_v50  ;;  %v638_v50 = vsub.f32 %v636_v36, %v637_v22 }
  0xae   :  { %624 = vmatmul.f32.gmra.mxu0 %v623_v45  ;;  %v824_v12 = vadd.f32 %v823_v17, %v700_v4  ;;  %762 = vmatmul.f32.gmra.mxu1 %v3104_v31  ;;  %v1659_v44 = vand.u32 4294901760, %v1658_v13  ;;  %v631_v45 = vand.u32 4294901760, %v630_v40  ;;  %v37_v17 = vld [vmem:[%s4163_s0 + $0x88] sm:$0xff]  ;;  %v4320_v40 = vand.u32 4294901760, %v2770_v2  ;;  %v3199_v13 = vpop.permute.xlu1 %49  ;;  %v147_v2 = vpop.permute.xlu0 %146 }
  0xaf   :  { %2130 = vmatpush.msra.mxu2 %v4318_v9  ;;  %97 = vperm.xlu1 %2590, %v37_v17   ;;  %v4321_v9 = vand.u32 4294901760, %v2809_v35 }
  0xb0   :  { %v3183_v62 = vadd.f32 %v971_v30, %v824_v12  ;;  %907 = vmatmul.f32.gmra.mxu2 %v628_v54  ;;  %1660 = vmatpush.msrb.mxu3 %v1659_v44  ;;  %v644_v44 = vsub.f32 %v433_v16, %v3185_v34 }
  0xb1   :  { %2134 = vmatpush.msra.mxu2 %v4319_v7  ;;  %2592 = vset.pattern.permute.xlu0 %v4315_v3 }
  0xb2   :  { %1072 = vmatmul.f32.gmra.mxu3 %v629_v20  ;;  %v360_v20 = vld [vmem:[%s4165_s2 + $0xc0] sm:$0xff]  ;;  %v645_v35 = vand.u32 4294901760, %v644_v44 }
  0xb3   :  { %v505_v25 = vpop.f32.mrf.mxu0  ;;  %2285 = vmatpush.msra.mxu3 %v2669_v5  ;;  %v703_v12 = vpop.f32.mrf.mxu1  ;;  %2138 = vmatpush.msra.mxu2 %v4320_v40  ;;  %v3202_v5 = vand.u32 127, %v18_v38  ;;  %v639_v38 = vand.u32 4294901760, %v638_v50  ;;  %v4327_v50 = vand.u32 4294901760, %v2947_v49 }
  0xb4   :  { %v828_v54 = vpop.f32.mrf.mxu2  ;;  %v704_v4 = vadd.f32 %v703_v12, %v505_v25  ;;  %94 = vperm.xlu2 %2588, %v36_v37   ;;  %v436_v25 = vsel %vm362_vm1, %v360_v20, 0  ;;  %v4322_v37 = vand.u32 4294901760, %v2839_v59  ;;  %v4323_v59 = vand.u32 4294901760, %v2874_v26 }
  0xb5   :  { %v977_v30 = vpop.f32.mrf.mxu3  ;;  %2287 = vmatpush.msra.mxu3 %v2691_v15  ;;  %2142 = vmatpush.msra.mxu2 %v4321_v9  ;;  %vm120_vm2 = vcmp.eq.s32.totalorder %v3169_v60, %v3202_v5  ;;  %vm220_vm3 = vcmp.eq.s32.totalorder %v147_v2, %v3202_v5  ;;  %v3218_v16 = vand.u32 4294901760, %v436_v25  ;;  %v4324_v12 = vand.u32 4294901760, %v2907_v63 }
  0xb6   :  { %632 = vmatmul.f32.gmra.mxu0 %v631_v45  ;;  %v829_v7 = vadd.f32 %v828_v54, %v704_v4  ;;  %766 = vmatmul.f32.gmra.mxu1 %v3128_v24  ;;  %v3225_v45 = vpop.permute.xlu2 %52  ;;  %vm3233_vm4 = vmor %vm120_vm2, %vm220_vm3  ;;  %v150_v4 = vpop.permute.xlu1 %149  ;;  %v4234_v60 = vmov 0.0   ;;  %vm121_vm5 = vcmp.eq.s32.totalorder %v3199_v13, %v3202_v5  ;;  %v4328_v9 = vand.u32 4294901760, %v2982_v47 }
  0xb7   :  { %2289 = vmatpush.msra.mxu3 %v2695_v19  ;;  %2146 = vmatpush.msra.mxu2 %v4322_v37  ;;  %v38_v19 = vld [vmem:[%s4163_s0 + $0x90] sm:$0xff]  ;;  %v652_v26 = vsub.f32 %v436_v25, %v3218_v16  ;;  %vm221_vm6 = vcmp.eq.s32.totalorder %v150_v4, %v3202_v5  ;;  %vm122_vm8 = vcmp.eq.s32.totalorder %v3225_v45, %v3202_v5  ;;  %v4336_v4 = vand.u32 4294901760, %v3126_v39 }
  0xb8   :  { %v3212_v15 = vadd.f32 %v977_v30, %v829_v7  ;;  %912 = vmatmul.f32.gmra.mxu2 %v636_v36  ;;  %100 = vperm.xlu1 %2590, %v38_v19   ;;  %v2460_v30 = vsel %vm3233_vm4, 1.0, %v4234_v60  ;;  %vm3267_vm7 = vmor %vm121_vm5, %vm221_vm6 }
  0xb9   :  { %2291 = vmatpush.msra.mxu3 %v2733_v48  ;;  %2150 = vmatpush.msra.mxu2 %v4323_v59  ;;  %v3255_v7 = vsub.f32 %v2460_v30, %v2460_v30  ;;  %v2461_v13 = vsel %vm3267_vm7, 1.0, %v4234_v60 }
  0xba   :  { %1078 = vmatmul.f32.gmra.mxu3 %v637_v22 }
  0xbb   :  { %v513_v36 = vpop.f32.mrf.mxu0  ;;  %2293 = vmatpush.msra.mxu3 %v2767_v1  ;;  %v707_v48 = vpop.f32.mrf.mxu1  ;;  %2154 = vmatpush.msra.mxu2 %v4324_v12  ;;  %v646_v1 = vsub.f32 %v644_v44, %v645_v35  ;;  %v3289_v12 = vsub.f32 %v2461_v13, %v2461_v13 }
  0xbc   :  { %v833_v22 = vpop.f32.mrf.mxu2  ;;  %v708_v54 = vadd.f32 %v707_v48, %v513_v36  ;;  %2591 = vset.pattern.permute.xlu2 %v4310_v42  ;;  %v4222_v36 = vand.u32 4294901760, %v3255_v7  ;;  %v4332_v48 = vand.u32 4294901760, %v3054_v51 }
  0xbd   :  { %v983_v20 = vpop.f32.mrf.mxu3  ;;  %2295 = vmatpush.msra.mxu3 %v2802_v33  ;;  %197 = vperm.xlu2 %2591, %v37_v17   ;;  %v653_v17 = vand.u32 4294901760, %v652_v26 }
  0xbe   :  { %640 = vmatmul.f32.gmra.mxu0 %v639_v38  ;;  %v834_v63 = vadd.f32 %v833_v22, %v708_v54  ;;  %770 = vmatmul.f32.gmra.mxu1 %v3152_v21  ;;  %v153_v38 = vpop.permute.xlu2 %152  ;;  %v4333_v22 = vand.u32 4294901760, %v3090_v28  ;;  %v1367_v51 = vsub.f32 %v3255_v7, %v4222_v36  ;;  %v40_v54 = vld [vmem:[%s4163_s0 + $0xa0] sm:$0xff] }
  0xbf   :  { %2297 = vmatpush.msra.mxu3 %v2833_v53  ;;  %2158 = vmatpush.msra.mxu2 %v4327_v50  ;;  %v647_v53 = vand.u32 4294901760, %v646_v1  ;;  %vm222_vm9 = vcmp.eq.s32.totalorder %v153_v38, %v3202_v5 }
  0xc0   :  { %v3247_v33 = vadd.f32 %v983_v20, %v834_v63  ;;  %917 = vmatmul.f32.gmra.mxu2 %v644_v44  ;;  %2593 = vset.pattern.permute.xlu1 %v4310_v42  ;;  %vm3302_vm10 = vmor %vm122_vm8, %vm222_vm9  ;;  %v1368_v30 = vand.u32 4294901760, %v1367_v51 }
  0xc1   :  { %2299 = vmatpush.msra.mxu3 %v2865_v18  ;;  %2162 = vmatpush.msra.mxu2 %v4328_v9  ;;  %v39_v18 = vld [vmem:[%s4163_s0 + $0x98] sm:$0xff]  ;;  %v2462_v45 = vsel %vm3302_vm10, 1.0, %v4234_v60  ;;  %v41_v9 = vld [vmem:[%s4163_s0 + $0xa8] sm:$0xff] }
  0xc2   :  { %1084 = vmatmul.f32.gmra.mxu3 %v645_v35  ;;  %203 = vperm.xlu1 %2593, %v39_v18   ;;  %v654_v35 = vsub.f32 %v652_v26, %v653_v17 }
  0xc3   :  { %v521_v49 = vpop.f32.mrf.mxu0  ;;  %2301 = vmatpush.msra.mxu3 %v2901_v55  ;;  %v711_v44 = vpop.f32.mrf.mxu1  ;;  %103 = vperm.xlu0 %2592, %v39_v18   ;;  %v4331_v55 = vand.u32 4294901760, %v3021_v52 }
  0xc4   :  { %v838_v2 = vpop.f32.mrf.mxu2  ;;  %v712_v25 = vadd.f32 %v711_v44, %v521_v49  ;;  %v56_v52 = vpop.permute.xlu1 %55 }
  0xc5   :  { %v989_v37 = vpop.f32.mrf.mxu3  ;;  %2303 = vmatpush.msra.mxu3 %v2934_v41  ;;  %2166 = vmatpush.msra.mxu2 %v4331_v55  ;;  %vm123_vm12 = vcmp.eq.s32.totalorder %v56_v52, %v3202_v5  ;;  %v59_v55 = vpop.permute.xlu0 %58 }
  0xc6   :  { %648 = vmatmul.f32.gmra.mxu0 %v647_v53  ;;  %200 = vperm.xlu2 %2591, %v38_v19   ;;  %v839_v59 = vadd.f32 %v838_v2, %v712_v25  ;;  %v655_v19 = vand.u32 4294901760, %v654_v35  ;;  %v156_v50 = vpop.permute.xlu2 %155  ;;  %v4218_v53 = vand.u32 4294901760, %v3289_v12  ;;  %vm124_vm15 = vcmp.eq.s32.totalorder %v59_v55, %v3202_v5 }
  0xc7   :  { %774 = vmatmul.f32.gmra.mxu1 %v3185_v34  ;;  %2305 = vmatpush.msra.mxu3 %v2972_v0  ;;  %vm223_vm11 = vcmp.eq.s32.totalorder %v156_v50, %v3202_v5 }
  0xc8   :  { %2170 = vmatpush.msra.mxu2 %v4332_v48  ;;  %v3282_v41 = vadd.f32 %v989_v37, %v839_v59  ;;  %v1375_v49 = vsub.f32 %v3289_v12, %v4218_v53  ;;  %vm3335_vm13 = vmor %vm123_vm12, %vm223_vm11 }
  0xc9   :  { %922 = vmatmul.f32.gmra.mxu2 %v652_v26  ;;  %2307 = vmatpush.msra.mxu3 %v3011_v23  ;;  %v2463_v13 = vsel %vm3335_vm13, 1.0, %v4234_v60 }
  0xca   :  { %1090 = vmatmul.f32.gmra.mxu3 %v653_v17  ;;  %2174 = vmatpush.msra.mxu2 %v4333_v22  ;;  %v4226_v17 = vmov 1.0   ;;  %v1376_v59 = vand.u32 4294901760, %v1375_v49  ;;  %v3356_v52 = vsub.f32 %v2463_v13, %v2463_v13 }
  0xcb   :  { %v529_v0 = vpop.f32.mrf.mxu0  ;;  %v715_v20 = vpop.f32.mrf.mxu1  ;;  %206 = vperm.xlu1 %2593, %v40_v54   ;;  %2595 = vset.pattern.permute.xlu0 %v4310_v42 }
  0xcc   :  { %v843_v1 = vpop.f32.mrf.mxu2  ;;  %v716_v28 = vadd.f32 %v715_v20, %v529_v0  ;;  %2309 = vmatpush.msra.mxu3 %v3041_v61  ;;  %2178 = vmatpush.msra.mxu2 %v4336_v4  ;;  %v4337_v61 = vand.u32 4294901760, %v3155_v56  ;;  %v159_v18 = vpop.permute.xlu1 %158 }
  0xcd   :  { %v995_v26 = vpop.f32.mrf.mxu3  ;;  %209 = vperm.xlu0 %2595, %v41_v9   ;;  %vm224_vm14 = vcmp.eq.s32.totalorder %v159_v18, %v3202_v5 }
  0xce   :  { %656 = vmatmul.f32.gmra.mxu0 %v655_v19  ;;  %2594 = vset.pattern.permute.xlu2 %v4315_v3  ;;  %v844_v23 = vadd.f32 %v843_v1, %v716_v28  ;;  %vm3361_vm0 = vmor %vm124_vm15, %vm224_vm14 }
  0xcf   :  { %778 = vmatmul.f32.gmra.mxu1 %v3218_v16  ;;  %106 = vperm.xlu2 %2594, %v40_v54   ;;  %v2464_v28 = vsel %vm3361_vm0, 1.0, %v4234_v60 }
  0xd0   :  { %2311 = vmatpush.msra.mxu3 %v3080_v11  ;;  %2182 = vmatpush.msra.mxu2 %v4337_v61  ;;  %v3318_v39 = vadd.f32 %v995_v26, %v844_v23  ;;  %v3328_v11 = vsub.f32 %v2462_v45, %v2462_v45  ;;  %v3375_v50 = vsub.f32 %v2464_v28, %v2464_v28 }
  0xd1   :  { %1369 = vmatmul.f32.vlgmr.msrb.gmra.mxu2 %v1368_v30  ;;  %v4215_v30 = vand.u32 4294901760, %v3356_v52 }
  0xd2   :  { %2485 = vmatmul.msk.f32.vlgmr.msrb.gmra.mxu3 %vm3233_vm4, %v4226_v17 }
  0xd3   :  { %v537_v56 = vpop.f32.mrf.mxu0  ;;  %2313 = vmatpush.msra.mxu3 %v3116_v6  ;;  %v719_v44 = vpop.f32.mrf.mxu1  ;;  %2596 = vset.pattern.permute.xlu1 %v4315_v3  ;;  %v4216_v6 = vand.u32 4294901760, %v3328_v11  ;;  %v1391_v61 = vsub.f32 %v3356_v52, %v4215_v30 }
  0xd4   :  { %v848_v2 = vpop.f32.mrf.mxu2  ;;  %v720_v25 = vadd.f32 %v719_v44, %v537_v56  ;;  %v162_v23 = vpop.permute.xlu1 %161 }
  0xd5   :  { %v1001_v37 = vpop.f32.mrf.mxu3  ;;  %2315 = vmatpush.msra.mxu3 %v3148_v32  ;;  %v62_v32 = vpop.permute.xlu2 %61  ;;  %v1383_v22 = vsub.f32 %v3328_v11, %v4216_v6  ;;  %2598 = vset.pattern.permute.xlu0 %v4315_v3  ;;  %vm225_vm2 = vcmp.eq.s32.totalorder %v162_v23, %v3202_v5  ;;  %v1392_v55 = vand.u32 4294901760, %v1391_v61 }
  0xd6   :  { %1114 = vmatmul.f32.vlgmr.msrb.gmra.mxu0 %v2680_v10  ;;  %v849_v35 = vadd.f32 %v848_v2, %v720_v25  ;;  %vm125_vm1 = vcmp.eq.s32.totalorder %v62_v32, %v3202_v5  ;;  %v4214_v25 = vand.u32 4294901760, %v3375_v50 }
  0xd7   :  { %1232 = vmatmul.f32.vlgmr.msrb.gmra.mxu1 %v2680_v10  ;;  %109 = vperm.xlu2 %2594, %v41_v9   ;;  %v42_v10 = vld [vmem:[%s4163_s0 + $0xb0] sm:$0xff]  ;;  %v1384_v4 = vand.u32 4294901760, %v1383_v22  ;;  %vm3388_vm3 = vmor %vm125_vm1, %vm225_vm2 }
  0xd8   :  { %v3348_v48 = vadd.f32 %v1001_v37, %v849_v35  ;;  %112 = vperm.xlu1 %2596, %v42_v10   ;;  %v165_v35 = vpop.permute.xlu0 %164  ;;  %v2465_v13 = vsel %vm3388_vm3, 1.0, %v4234_v60 }
  0xd9   :  { %1377 = vmatmul.f32.gmra.mxu2 %v1376_v59  ;;  %vm226_vm6 = vcmp.eq.s32.totalorder %v165_v35, %v3202_v5 }
  0xda   :  { %2486 = vmatmul.msk.f32.gmra.mxu3 %vm3267_vm7, %v4226_v17 }
  0xdb   :  { %v545_v19 = vpop.f32.mrf.mxu0  ;;  %v723_v51 = vpop.f32.mrf.mxu1 }
  0xdc   :  { %v853_v54 = vpop.f32.mrf.mxu2  ;;  %v724_v20 = vadd.f32 %v723_v51, %v545_v19  ;;  %v68_v59 = vpop.permute.xlu1 %67 }
  0xdd   :  { %v1007_v1 = vpop.f32.mrf.mxu3  ;;  %v65_v9 = vpop.permute.xlu2 %64  ;;  %vm127_vm11 = vcmp.eq.s32.totalorder %v68_v59, %v3202_v5 }
  0xde   :  { %1118 = vmatmul.f32.gmra.mxu0 %v2689_v14  ;;  %v854_v26 = vadd.f32 %v853_v54, %v724_v20  ;;  %vm126_vm5 = vcmp.eq.s32.totalorder %v65_v9, %v3202_v5 }
  0xdf   :  { %1236 = vmatmul.f32.gmra.mxu1 %v2689_v14  ;;  %2597 = vset.pattern.permute.xlu2 %v4310_v42  ;;  %v43_v14 = vld [vmem:[%s4163_s0 + $0xb8] sm:$0xff]  ;;  %vm3411_vm8 = vmor %vm126_vm5, %vm226_vm6 }
  0xe0   :  { %212 = vperm.xlu2 %2597, %v42_v10   ;;  %v3373_v3 = vadd.f32 %v1007_v1, %v854_v26  ;;  %115 = vperm.xlu1 %2596, %v43_v14   ;;  %v1399_v10 = vsub.f32 %v3375_v50, %v4214_v25 }
  0xe1   :  { %1385 = vmatmul.f32.gmra.mxu2 %v1384_v4 }
  0xe2   :  { %2487 = vmatmul.msk.f32.gmra.mxu3 %vm3302_vm10, %v4226_v17  ;;  %v1400_v28 = vand.u32 4294901760, %v1399_v10 }
  0xe3   :  { %v553_v45 = vpop.f32.mrf.mxu0  ;;  %v727_v56 = vpop.f32.mrf.mxu1 }
  0xe4   :  { %v858_v49 = vpop.f32.mrf.mxu2  ;;  %v728_v18 = vadd.f32 %v727_v56, %v553_v45  ;;  %v71_v61 = vpop.permute.xlu1 %70 }
  0xe5   :  { %v1013_v44 = vpop.f32.mrf.mxu3  ;;  %v168_v26 = vpop.permute.xlu2 %167  ;;  %vm128_vm15 = vcmp.eq.s32.totalorder %v71_v61, %v3202_v5 }
  0xe6   :  { %1122 = vmatmul.f32.gmra.mxu0 %v2708_v27  ;;  %v859_v37 = vadd.f32 %v858_v49, %v728_v18  ;;  %vm227_vm9 = vcmp.eq.s32.totalorder %v168_v26, %v3202_v5 }
  0xe7   :  { %1240 = vmatmul.f32.gmra.mxu1 %v2708_v27  ;;  %v3408_v27 = vsub.f32 %v2465_v13, %v2465_v13  ;;  %vm3433_vm12 = vmor %vm127_vm11, %vm227_vm9 }
  0xe8   :  { %215 = vperm.xlu2 %2597, %v43_v14   ;;  %v3398_v32 = vadd.f32 %v1013_v44, %v859_v37  ;;  %2599 = vset.pattern.permute.xlu1 %v4310_v42  ;;  %v2466_v14 = vsel %vm3411_vm8, 1.0, %v4234_v60  ;;  %v2467_v59 = vsel %vm3433_vm12, 1.0, %v4234_v60 }
  0xe9   :  { %1393 = vmatmul.f32.gmra.mxu2 %v1392_v55  ;;  %v4213_v23 = vand.u32 4294901760, %v3408_v27  ;;  %v3431_v9 = vsub.f32 %v2466_v14, %v2466_v14 }
  0xea   :  { %2488 = vmatmul.msk.f32.gmra.mxu3 %vm3335_vm13, %v4226_v17 }
  0xeb   :  { %v561_v19 = vpop.f32.mrf.mxu0  ;;  %v731_v22 = vpop.f32.mrf.mxu1  ;;  %v1407_v18 = vsub.f32 %v3408_v27, %v4213_v23 }
  0xec   :  { %v863_v51 = vpop.f32.mrf.mxu2  ;;  %v732_v54 = vadd.f32 %v731_v22, %v561_v19  ;;  %v4212_v22 = vand.u32 4294901760, %v3431_v9 }
  0xed   :  { %v1019_v20 = vpop.f32.mrf.mxu3  ;;  %v1408_v10 = vand.u32 4294901760, %v1407_v18  ;;  %v171_v19 = vpop.permute.xlu2 %170 }
  0xee   :  { %1126 = vmatmul.f32.gmra.mxu0 %v2727_v46  ;;  %v864_v4 = vadd.f32 %v863_v51, %v732_v54  ;;  %v3448_v54 = vsub.f32 %v2467_v59, %v2467_v59  ;;  %vm228_vm14 = vcmp.eq.s32.totalorder %v171_v19, %v3202_v5 }
  0xef   :  { %1244 = vmatmul.f32.gmra.mxu1 %v2727_v46  ;;  %v44_v46 = vld [vmem:[%s4163_s0 + $0xc0] sm:$0xff]  ;;  %vm3459_vm1 = vmor %vm128_vm15, %vm228_vm14  ;;  %s2631_s0 = smov [#allocation2]  }
  0xf0   :  { %v3423_v45 = vadd.f32 %v1019_v20, %v864_v4  ;;  %218 = vperm.xlu1 %2599, %v44_v46   ;;  %118 = vperm.xlu0 %2598, %v44_v46   ;;  %v4211_v18 = vand.u32 4294901760, %v3448_v54  ;;  %s2446_s12 = sshll.u32 %s2631_s0, 4  ;;  %s2447_s12 = int_to_ptr.vmem [resolvable:$true] %s2446_s12 }
  0xf1   :  { %1401 = vmatmul.f32.gmra.mxu2 %v1400_v28  ;;  %v174_v28 = vpop.permute.xlu1 %173 }
  0xf2   :  { %2489 = vmatmul.msk.f32.gmra.mxu3 %vm3361_vm0, %v4226_v17  ;;  %vm229_vm2 = vcmp.eq.s32.totalorder %v174_v28, %v3202_v5 }
  0xf3   :  { %v569_v56 = vpop.f32.mrf.mxu0  ;;  %v735_v44 = vpop.f32.mrf.mxu1 }
  0xf4   :  { %v868_v37 = vpop.f32.mrf.mxu2  ;;  %v736_v55 = vadd.f32 %v735_v44, %v569_v56  ;;  %v74_v44 = vpop.permute.xlu0 %73 }
  0xf5   :  { %v1025_v35 = vpop.f32.mrf.mxu3  ;;  %vm129_vm5 = vcmp.eq.s32.totalorder %v74_v44, %v3202_v5  ;;  %v77_v59 = vpop.permute.xlu2 %76 }
  0xf6   :  { %1130 = vmatmul.f32.gmra.mxu0 %v2755_v58  ;;  %v869_v13 = vadd.f32 %v868_v37, %v736_v55  ;;  %vm3481_vm6 = vmor %vm129_vm5, %vm229_vm2  ;;  %vm130_vm9 = vcmp.eq.s32.totalorder %v77_v59, %v3202_v5 }
  0xf7   :  { %1248 = vmatmul.f32.gmra.mxu1 %v2755_v58  ;;  %v1415_v58 = vsub.f32 %v3431_v9, %v4212_v22 }
  0xf8   :  { %v3446_v51 = vadd.f32 %v1025_v35, %v869_v13  ;;  %2600 = vset.pattern.permute.xlu0 %v4310_v42  ;;  %v2468_v42 = vsel %vm3459_vm1, 1.0, %v4234_v60  ;;  %v1423_v35 = vsub.f32 %v3448_v54, %v4211_v18 }
  0xf9   :  { %1409 = vmatmul.f32.gmra.mxu2 %v1408_v10  ;;  %v1416_v37 = vand.u32 4294901760, %v1415_v58 }
  0xfa   :  { %2490 = vmatmul.msk.f32.gmra.mxu3 %vm3388_vm3, %v4226_v17 }
  0xfb   :  { %v577_v20 = vpop.f32.mrf.mxu0  ;;  %v739_v26 = vpop.f32.mrf.mxu1 }
  0xfc   :  { %v873_v4 = vpop.f32.mrf.mxu2  ;;  %v740_v14 = vadd.f32 %v739_v26, %v577_v20  ;;  %v1424_v26 = vand.u32 4294901760, %v1423_v35 }
  0xfd   :  { %v1031_v46 = vpop.f32.mrf.mxu3  ;;  %v80_v35 = vpop.permute.xlu2 %79 }
  0xfe   :  { %1134 = vmatmul.f32.gmra.mxu0 %v2776_v8  ;;  %v874_v61 = vadd.f32 %v873_v4, %v740_v14  ;;  %v2469_v4 = vsel %vm3481_vm6, 1.0, %v4234_v60  ;;  %vm131_vm15 = vcmp.eq.s32.totalorder %v80_v35, %v3202_v5 }
  0xff   :  { %1252 = vmatmul.f32.gmra.mxu1 %v2776_v8  ;;  %v3479_v8 = vsub.f32 %v2468_v42, %v2468_v42 }
 0x100   :  { %v3471_v55 = vadd.f32 %v1031_v46, %v874_v61  ;;  %v177_v46 = vpop.permute.xlu1 %176 }
 0x101   :  { %1417 = vmatmul.f32.gmra.mxu2 %v1416_v37  ;;  %v4209_v44 = vand.u32 4294901760, %v3479_v8  ;;  %v3493_v37 = vsub.f32 %v2469_v4, %v2469_v4  ;;  %vm230_vm11 = vcmp.eq.s32.totalorder %v177_v46, %v3202_v5 }
 0x102   :  { %2491 = vmatmul.msk.f32.gmra.mxu3 %vm3411_vm8, %v4226_v17  ;;  %vm3503_vm14 = vmor %vm130_vm9, %vm230_vm11 }
 0x103   :  { %v585_v13 = vpop.f32.mrf.mxu0  ;;  %v743_v19 = vpop.f32.mrf.mxu1 }
 0x104   :  { %v878_v20 = vpop.f32.mrf.mxu2  ;;  %v744_v58 = vadd.f32 %v743_v19, %v585_v13 }
 0x105   :  { %v1037_v28 = vpop.f32.mrf.mxu3  ;;  %v183_v18 = vpop.permute.xlu2 %182 }
 0x106   :  { %1138 = vmatmul.f32.gmra.mxu0 %v2796_v29  ;;  %v879_v14 = vadd.f32 %v878_v20, %v744_v58  ;;  %vm232_vm9 = vcmp.eq.s32.totalorder %v183_v18, %v3202_v5 }
 0x107   :  { %1256 = vmatmul.f32.gmra.mxu1 %v2796_v29  ;;  %v1431_v29 = vsub.f32 %v3479_v8, %v4209_v44  ;;  %v2470_v44 = vsel %vm3503_vm14, 1.0, %v4234_v60 }
 0x108   :  { %v3491_v61 = vadd.f32 %v1037_v28, %v879_v14  ;;  %v4352_v28 = vmov 0  ;;  %v180_v14 = vpop.permute.xlu0 %179  ;;  %v83_v46 = vpop.permute.xlu1 %82 }
 0x109   :  { %1425 = vmatmul.f32.gmra.mxu2 %v1424_v26  ;;  %v4353_v28 = vsel %vm3503_vm14, 4294967295, %v4352_v28  ;;  %v4210_v26 = vand.u32 4294901760, %v3493_v37  ;;  %v1432_v4 = vand.u32 4294901760, %v1431_v29  ;;  %vm231_vm2 = vcmp.eq.s32.totalorder %v180_v14, %v3202_v5 }
 0x10a   :  { %2492 = vmatmul.msk.f32.gmra.mxu3 %vm3433_vm12, %v4226_v17  ;;  %vm3525_vm5 = vmor %vm131_vm15, %vm231_vm2  ;;  %vm132_vm11 = vcmp.eq.s32.totalorder %v83_v46, %v3202_v5 }
 0x10b   :  { %v593_v42 = vpop.f32.mrf.mxu0  ;;  %v747_v13 = vpop.f32.mrf.mxu1  ;;  %vm3544_vm15 = vmor %vm132_vm11, %vm232_vm9 }
 0x10c   :  { %v883_v19 = vpop.f32.mrf.mxu2  ;;  %v748_v20 = vadd.f32 %v747_v13, %v593_v42  ;;  %v1439_v13 = vsub.f32 %v3493_v37, %v4210_v26 }
 0x10d   :  { %v1043_v58 = vpop.f32.mrf.mxu3  ;;  %v186_v25 = vpop.permute.xlu2 %185 }
 0x10e   :  { %1142 = vmatmul.f32.gmra.mxu0 %v2820_v43  ;;  %v884_v59 = vadd.f32 %v883_v19, %v748_v20  ;;  %v1440_v26 = vand.u32 4294901760, %v1439_v13  ;;  %vm233_vm2 = vcmp.eq.s32.totalorder %v186_v25, %v3202_v5  ;;  %v4367_v25 = vld [vmem:[#allocation6_spill] sm:$0xff] }
 0x10f   :  { %1260 = vmatmul.f32.gmra.mxu1 %v2820_v43  ;;  %v3523_v43 = vsub.f32 %v2470_v44, %v2470_v44  ;;  %v2471_v44 = vsel %vm3525_vm5, 1.0, %v4234_v60 }
 0x110   :  { %v3513_v42 = vadd.f32 %v1043_v58, %v884_v59  ;;  %v86_v13 = vpop.permute.xlu1 %85 }
 0x111   :  { %1433 = vmatmul.f32.gmra.mxu2 %v1432_v4  ;;  %4354 = vst [vmem:[#allocation20_spill] sm:$0xff] %v3523_v43  ;;  %v4355_v4 = vmov 0  ;;  %v4217_v35 = vand.u32 4294901760, %v3523_v43  ;;  %vm133_vm9 = vcmp.eq.s32.totalorder %v86_v13, %v3202_v5 }
 0x112   :  { %2493 = vmatmul.msk.f32.gmra.mxu3 %vm3459_vm1, %v4226_v17  ;;  %v4356_v4 = vsel %vm3525_vm5, 4294967295, %v4355_v4  ;;  %vm3569_vm11 = vmor %vm133_vm9, %vm233_vm2 }
 0x113   :  { %v601_v29 = vpop.f32.mrf.mxu0  ;;  %v751_v19 = vpop.f32.mrf.mxu1  ;;  %4357 = vst [vmem:[#allocation21_spill] sm:$0xff] %v4356_v4  ;;  %v1447_v18 = vsub.f32 %v3523_v43, %v4217_v35 }
 0x114   :  { %v888_v20 = vpop.f32.mrf.mxu2  ;;  %v752_v58 = vadd.f32 %v751_v19, %v601_v29  ;;  %v3542_v29 = vsub.f32 %v2471_v44, %v2471_v44  ;;  %v4359_v19 = vmov 0 }
 0x115   :  { %v1049_v59 = vpop.f32.mrf.mxu3  ;;  %v4360_v19 = vsel %vm3544_vm15, 4294967295, %v4359_v19  ;;  %v1448_v23 = vand.u32 4294901760, %v1447_v18  ;;  %v92_v36 = vpop.permute.xlu2 %91 }
 0x116   :  { %1146 = vmatmul.f32.gmra.mxu0 %v2835_v57  ;;  %v889_v22 = vadd.f32 %v888_v20, %v752_v58  ;;  %4358 = vst [vmem:[#allocation22_spill] sm:$0xff] %v3542_v29  ;;  %v2472_v58 = vsel %vm3544_vm15, 1.0, %v4234_v60  ;;  %v4219_v30 = vand.u32 4294901760, %v3542_v29 }
 0x117   :  { %1264 = vmatmul.f32.gmra.mxu1 %v2835_v57  ;;  %4361 = vst [vmem:[#allocation23_spill] sm:$0xff] %v4360_v19  ;;  %v3559_v35 = vsub.f32 %v2472_v58, %v2472_v58 }
 0x118   :  { %v3537_v14 = vadd.f32 %v1049_v59, %v889_v22  ;;  %v4362_v59 = vld [vmem:[#allocation5_spill] sm:$0xff]  ;;  %v1455_v18 = vsub.f32 %v3542_v29, %v4219_v30  ;;  %v2473_v30 = vsel %vm3569_vm11, 1.0, %v4234_v60 }
 0x119   :  { %1441 = vmatmul.f32.gmra.mxu2 %v1440_v26  ;;  %4363 = vst [vmem:[#allocation5_spill] sm:$0xff] %v3559_v35 }
 0x11a   :  { %2494 = vmatmul.msk.f32.gmra.mxu3 %vm3481_vm6, %v4226_v17  ;;  %v1456_v53 = vand.u32 4294901760, %v1455_v18  ;;  %v3589_v18 = vsub.f32 %v2473_v30, %v2473_v30 }
 0x11b   :  { %v609_v57 = vpop.f32.mrf.mxu0  ;;  %v755_v46 = vpop.f32.mrf.mxu1 }
 0x11c   :  { %v893_v22 = vpop.f32.mrf.mxu2  ;;  %v756_v20 = vadd.f32 %v755_v46, %v609_v57  ;;  %v189_v46 = vpop.permute.xlu1 %188  ;;  %4369 = vst [vmem:[#allocation25_spill] sm:$0xff] %v3589_v18 }
 0x11d   :  { %v1055_v26 = vpop.f32.mrf.mxu3 }
 0x11e   :  { %1150 = vmatmul.f32.gmra.mxu0 %v4362_v59  ;;  %v894_v44 = vadd.f32 %v893_v22, %v756_v20 }
 0x11f   :  { %1268 = vmatmul.f32.gmra.mxu1 %v4362_v59  ;;  %v4223_v59 = vand.u32 4294901760, %v3559_v35 }
 0x120   :  { %v3557_v6 = vadd.f32 %v1055_v26, %v894_v44  ;;  %v89_v44 = vpop.permute.xlu0 %88 }
 0x121   :  { %1449 = vmatmul.f32.gmra.mxu2 %v1448_v23  ;;  %v4364_v23 = vmov 0  ;;  %vm134_vm2 = vcmp.eq.s32.totalorder %v89_v44, %v3202_v5 }
 0x122   :  { %2495 = vmatmul.msk.f32.gmra.mxu3 %vm3503_vm14, %v4226_v17  ;;  %v4365_v23 = vsel %vm3569_vm11, 4294967295, %v4364_v23  ;;  %vm234_vm14 = vcmp.eq.s32.totalorder %v189_v46, %v3202_v5 }
 0x123   :  { %v617_v57 = vpop.f32.mrf.mxu0  ;;  %v759_v22 = vpop.f32.mrf.mxu1  ;;  %4366 = vst [vmem:[#allocation24_spill] sm:$0xff] %v4365_v23  ;;  %vm3591_vm9 = vmor %vm134_vm2, %vm234_vm14  ;;  %vm135_vm14 = vcmp.eq.s32.totalorder %v92_v36, %v3202_v5 }
 0x124   :  { %v898_v20 = vpop.f32.mrf.mxu2  ;;  %v760_v26 = vadd.f32 %v759_v22, %v617_v57  ;;  %v1463_v22 = vsub.f32 %v3559_v35, %v4223_v59  ;;  %v2474_v59 = vsel %vm3591_vm9, 1.0, %v4234_v60  ;;  %v192_v30 = vpop.permute.xlu1 %191  ;;  %v4380_v60 = vld [vmem:[#allocation8_spill] sm:$0xff] }
 0x125   :  { %v1061_v58 = vpop.f32.mrf.mxu3  ;;  %v3603_v4 = vsub.f32 %v2474_v59, %v2474_v59  ;;  %vm235_vm2 = vcmp.eq.s32.totalorder %v192_v30, %v3202_v5  ;;  %v4377_v59 = vmov 0 }
 0x126   :  { %1154 = vmatmul.f32.gmra.mxu0 %v4367_v25  ;;  %v899_v13 = vadd.f32 %v898_v20, %v760_v26  ;;  %v4370_v26 = vmov 0 }
 0x127   :  { %1272 = vmatmul.f32.gmra.mxu1 %v4367_v25  ;;  %v4371_v26 = vsel %vm3591_vm9, 4294967295, %v4370_v26  ;;  %v1464_v25 = vand.u32 4294901760, %v1463_v22  ;;  %4375 = vst [vmem:[#allocation27_spill] sm:$0xff] %v3603_v4 }
 0x128   :  { %v3581_v57 = vadd.f32 %v1061_v58, %v899_v13  ;;  %4372 = vst [vmem:[#allocation26_spill] sm:$0xff] %v4371_v26  ;;  %v4373_v13 = vld [vmem:[#allocation7_spill] sm:$0xff]  ;;  %v195_v19 = vpop.permute.xlu0 %194 }
 0x129   :  { %1457 = vmatmul.f32.gmra.mxu2 %v1456_v53 }
 0x12a   :  { %4368 = vst [vmem:[#allocation6_spill] sm:$0xff] %v3581_v57  ;;  %2496 = vmatmul.msk.f32.gmra.mxu3 %vm3525_vm5, %v4226_v17  ;;  %v4238_v17 = vand.u32 4294901760, %v3589_v18  ;;  %vm3613_vm5 = vmor %vm135_vm14, %vm235_vm2  ;;  %vm236_vm2 = vcmp.eq.s32.totalorder %v195_v19, %v3202_v5 }
 0x12b   :  { %v625_v20 = vpop.f32.mrf.mxu0  ;;  %v763_v46 = vpop.f32.mrf.mxu1  ;;  %v4378_v59 = vsel %vm3613_vm5, 4294967295, %v4377_v59 }
 0x12c   :  { %v903_v58 = vpop.f32.mrf.mxu2  ;;  %v764_v44 = vadd.f32 %v763_v46, %v625_v20  ;;  %v4376_v20 = vmov 1.0   ;;  %v1471_v46 = vsub.f32 %v3589_v18, %v4238_v17  ;;  %4379 = vst [vmem:[#allocation28_spill] sm:$0xff] %v4378_v59  ;;  %v4381_v17 = vmov 0.0  }
 0x12d   :  { %v1067_v53 = vpop.f32.mrf.mxu3  ;;  %v2475_v18 = vsel %vm3613_vm5, 1.0, %v4381_v17 }
 0x12e   :  { %1158 = vmatmul.f32.gmra.mxu0 %v4373_v13  ;;  %v904_v35 = vadd.f32 %v903_v58, %v764_v44  ;;  %v95_v58 = vpop.permute.xlu2 %94  ;;  %v1472_v30 = vand.u32 4294901760, %v1471_v46 }
 0x12f   :  { %1276 = vmatmul.f32.gmra.mxu1 %v4373_v13  ;;  %v4243_v13 = vand.u32 4294901760, %v3603_v4  ;;  %vm136_vm14 = vcmp.eq.s32.totalorder %v95_v58, %v3202_v5 }
 0x130   :  { %v3601_v29 = vadd.f32 %v1067_v53, %v904_v35 }
 0x131   :  { %1465 = vmatmul.f32.gmra.mxu2 %v1464_v25  ;;  %v4439_v10 = vld [vmem:[#allocation6_spill] sm:$0xff] }
 0x132   :  { %4374 = vst [vmem:[#allocation7_spill] sm:$0xff] %v3601_v29  ;;  %2497 = vmatmul.msk.f32.gmra.mxu3 %vm3544_vm15, %v4376_v20  ;;  %v98_v29 = vpop.permute.xlu1 %97  ;;  %vm3635_vm15 = vmor %vm136_vm14, %vm236_vm2 }
 0x133   :  { %v633_v22 = vpop.f32.mrf.mxu0  ;;  %v767_v44 = vpop.f32.mrf.mxu1  ;;  %vm137_vm14 = vcmp.eq.s32.totalorder %v98_v29, %v3202_v5 }
 0x134   :  { %v908_v35 = vpop.f32.mrf.mxu2  ;;  %v768_v53 = vadd.f32 %v767_v44, %v633_v22  ;;  %v1479_v44 = vsub.f32 %v3603_v4, %v4243_v13 }
 0x135   :  { %v1073_v25 = vpop.f32.mrf.mxu3 }
 0x136   :  { %1162 = vmatmul.f32.gmra.mxu0 %v4380_v60  ;;  %v909_v36 = vadd.f32 %v908_v35, %v768_v53  ;;  %v1480_v13 = vand.u32 4294901760, %v1479_v44  ;;  %v198_v4 = vpop.permute.xlu2 %197 }
 0x137   :  { %1280 = vmatmul.f32.gmra.mxu1 %v4380_v60  ;;  %v3633_v60 = vsub.f32 %v2475_v18, %v2475_v18  ;;  %v2476_v18 = vsel %vm3635_vm15, 1.0, %v4381_v17 }
 0x138   :  { %v3623_v22 = vadd.f32 %v1073_v25, %v909_v36 }
 0x139   :  { %1473 = vmatmul.f32.gmra.mxu2 %v1472_v30  ;;  %4383 = vst [vmem:[#allocation29_spill] sm:$0xff] %v3633_v60  ;;  %v4384_v30 = vmov 0  ;;  %v4254_v19 = vand.u32 4294901760, %v3633_v60 }
 0x13a   :  { %4382 = vst [vmem:[#allocation8_spill] sm:$0xff] %v3623_v22  ;;  %2498 = vmatmul.msk.f32.gmra.mxu3 %vm3569_vm11, %v4376_v20  ;;  %v4385_v30 = vsel %vm3635_vm15, 4294967295, %v4384_v30  ;;  %v4387_v22 = vld [vmem:[#allocation9_spill] sm:$0xff]  ;;  %vm237_vm11 = vcmp.eq.s32.totalorder %v198_v4, %v3202_v5  ;;  %v101_v44 = vpop.permute.xlu1 %100 }
 0x13b   :  { %v641_v46 = vpop.f32.mrf.mxu0  ;;  %v771_v35 = vpop.f32.mrf.mxu1  ;;  %4386 = vst [vmem:[#allocation30_spill] sm:$0xff] %v4385_v30  ;;  %vm3654_vm2 = vmor %vm137_vm14, %vm237_vm11  ;;  %v1487_v4 = vsub.f32 %v3633_v60, %v4254_v19  ;;  %vm138_vm14 = vcmp.eq.s32.totalorder %v101_v44, %v3202_v5 }
 0x13c   :  { %v913_v53 = vpop.f32.mrf.mxu2  ;;  %v772_v25 = vadd.f32 %v771_v35, %v641_v46  ;;  %v3652_v46 = vsub.f32 %v2476_v18, %v2476_v18  ;;  %v4390_v35 = vmov 0 }
 0x13d   :  { %v1079_v36 = vpop.f32.mrf.mxu3  ;;  %v4391_v35 = vsel %vm3654_vm2, 4294967295, %v4390_v35  ;;  %v1488_v26 = vand.u32 4294901760, %v1487_v4 }
 0x13e   :  { %1166 = vmatmul.f32.gmra.mxu0 %v4387_v22  ;;  %v914_v23 = vadd.f32 %v913_v53, %v772_v25  ;;  %4389 = vst [vmem:[#allocation31_spill] sm:$0xff] %v3652_v46  ;;  %v2477_v25 = vsel %vm3654_vm2, 1.0, %v4381_v17  ;;  %v4259_v43 = vand.u32 4294901760, %v3652_v46 }
 0x13f   :  { %1284 = vmatmul.f32.gmra.mxu1 %v4387_v22  ;;  %4392 = vst [vmem:[#allocation32_spill] sm:$0xff] %v4391_v35  ;;  %v3669_v19 = vsub.f32 %v2477_v25, %v2477_v25 }
 0x140   :  { %v3647_v58 = vadd.f32 %v1079_v36, %v914_v23  ;;  %v4393_v36 = vld [vmem:[#allocation10_spill] sm:$0xff]  ;;  %v1495_v4 = vsub.f32 %v3652_v46, %v4259_v43 }
 0x141   :  { %1481 = vmatmul.f32.gmra.mxu2 %v1480_v13  ;;  %4395 = vst [vmem:[#allocation33_spill] sm:$0xff] %v3669_v19 }
 0x142   :  { %4388 = vst [vmem:[#allocation9_spill] sm:$0xff] %v3647_v58  ;;  %2499 = vmatmul.msk.f32.gmra.mxu3 %vm3591_vm9, %v4376_v20  ;;  %v201_v58 = vpop.permute.xlu2 %200  ;;  %v1496_v60 = vand.u32 4294901760, %v1495_v4 }
 0x143   :  { %v649_v22 = vpop.f32.mrf.mxu0  ;;  %vm238_vm11 = vcmp.eq.s32.totalorder %v201_v58, %v3202_v5  ;;  %v4399_v58 = vld [vmem:[#allocation11_spill] sm:$0xff] }
 0x144   :  { %v775_v29 = vpop.f32.mrf.mxu1  ;;  %v918_v23 = vpop.f32.mrf.mxu2  ;;  %vm3679_vm9 = vmor %vm138_vm14, %vm238_vm11 }
 0x145   :  { %v776_v53 = vadd.f32 %v775_v29, %v649_v22  ;;  %v1085_v13 = vpop.f32.mrf.mxu3  ;;  %v204_v29 = vpop.permute.xlu1 %203  ;;  %v2478_v43 = vsel %vm3679_vm9, 1.0, %v4381_v17 }
 0x146   :  { %1170 = vmatmul.f32.gmra.mxu0 %v4393_v36  ;;  %v3699_v4 = vsub.f32 %v2478_v43, %v2478_v43 }
 0x147   :  { %v919_v18 = vadd.f32 %v918_v23, %v776_v53  ;;  %1288 = vmatmul.f32.gmra.mxu1 %v4393_v36  ;;  %v4264_v36 = vand.u32 4294901760, %v3669_v19 }
 0x148   :  { %4401 = vst [vmem:[#allocation35_spill] sm:$0xff] %v3699_v4  ;;  %v4275_v30 = vand.u32 4294901760, %v3699_v4 }
 0x149   :  { %v3667_v57 = vadd.f32 %v1085_v13, %v919_v18  ;;  %1489 = vmatmul.f32.gmra.mxu2 %v1488_v26  ;;  %v4396_v26 = vmov 0  ;;  %v104_v18 = vpop.permute.xlu0 %103 }
 0x14a   :  { %2500 = vmatmul.msk.f32.gmra.mxu3 %vm3613_vm5, %v4376_v20  ;;  %v4397_v26 = vsel %vm3679_vm9, 4294967295, %v4396_v26  ;;  %vm239_vm5 = vcmp.eq.s32.totalorder %v204_v29, %v3202_v5  ;;  %vm139_vm11 = vcmp.eq.s32.totalorder %v104_v18, %v3202_v5  ;;  %v107_v46 = vpop.permute.xlu2 %106  ;;  %v4405_v29 = vld [vmem:[#allocation15_spill] sm:$0xff] }
 0x14b   :  { %4394 = vst [vmem:[#allocation10_spill] sm:$0xff] %v3667_v57  ;;  %v657_v22 = vpop.f32.mrf.mxu0  ;;  %vm3701_vm14 = vmor %vm139_vm11, %vm239_vm5  ;;  %vm140_vm5 = vcmp.eq.s32.totalorder %v107_v46, %v3202_v5 }
 0x14c   :  { %v779_v23 = vpop.f32.mrf.mxu1  ;;  %v923_v53 = vpop.f32.mrf.mxu2  ;;  %4398 = vst [vmem:[#allocation34_spill] sm:$0xff] %v4397_v26  ;;  %v4418_v26 = vld [vmem:[#allocation14_spill] sm:$0xff] }
 0x14d   :  { %v780_v13 = vadd.f32 %v779_v23, %v657_v22  ;;  %v1091_v25 = vpop.f32.mrf.mxu3  ;;  %v1503_v23 = vsub.f32 %v3669_v19, %v4264_v36  ;;  %v4406_v36 = vld [vmem:[#allocation12_spill] sm:$0xff]  ;;  %v2479_v19 = vsel %vm3701_vm14, 1.0, %v4381_v17  ;;  %v207_v43 = vpop.permute.xlu1 %206 }
 0x14e   :  { %1174 = vmatmul.f32.gmra.mxu0 %v4399_v58  ;;  %v3712_v57 = vsub.f32 %v2479_v19, %v2479_v19  ;;  %vm240_vm11 = vcmp.eq.s32.totalorder %v207_v43, %v3202_v5 }
 0x14f   :  { %v924_v44 = vadd.f32 %v923_v53, %v780_v13  ;;  %1292 = vmatmul.f32.gmra.mxu1 %v4399_v58  ;;  %v4402_v13 = vmov 0 }
 0x150   :  { %v4403_v13 = vsel %vm3701_vm14, 4294967295, %v4402_v13  ;;  %4407 = vst [vmem:[#allocation15_spill] sm:$0xff] %v3712_v57 }
 0x151   :  { %v3691_v22 = vadd.f32 %v1091_v25, %v924_v44  ;;  %1497 = vmatmul.f32.gmra.mxu2 %v1496_v60  ;;  %4404 = vst [vmem:[#allocation36_spill] sm:$0xff] %v4403_v13  ;;  %v1504_v44 = vand.u32 4294901760, %v1503_v23  ;;  %v210_v35 = vpop.permute.xlu0 %209 }
 0x152   :  { %2501 = vmatmul.msk.f32.gmra.mxu3 %vm3635_vm15, %v4376_v20  ;;  %vm3725_vm15 = vmor %vm140_vm5, %vm240_vm11  ;;  %vm241_vm11 = vcmp.eq.s32.totalorder %v210_v35, %v3202_v5 }
 0x153   :  { %4400 = vst [vmem:[#allocation11_spill] sm:$0xff] %v3691_v22  ;;  %v1115_v53 = vpop.f32.mrf.mxu0 }
 0x154   :  { %v1116_v25 = vadd.f32 %v1115_v53, %v4405_v29  ;;  %v1233_v18 = vpop.f32.mrf.mxu1  ;;  %v1370_v60 = vpop.f32.mrf.mxu2 }
 0x155   :  { %v1663_v58 = vpop.f32.mrf.mxu3  ;;  %v110_v29 = vpop.permute.xlu2 %109 }
 0x156   :  { %v1234_v22 = vadd.f32 %v1233_v18, %v1116_v25  ;;  %1178 = vmatmul.f32.gmra.mxu0 %v4406_v36  ;;  %vm141_vm5 = vcmp.eq.s32.totalorder %v110_v29, %v3202_v5 }
 0x157   :  { %1296 = vmatmul.f32.gmra.mxu1 %v4406_v36  ;;  %v1511_v36 = vsub.f32 %v3699_v4, %v4275_v30  ;;  %v113_v4 = vpop.permute.xlu1 %112 }
 0x158   :  { %v1371_v59 = vadd.f32 %v1370_v60, %v1234_v22  ;;  %v4409_v22 = vld [vmem:[#allocation17_spill] sm:$0xff]  ;;  %v4410_v60 = vmov 0 }
 0x159   :  { %1505 = vmatmul.f32.gmra.mxu2 %v1504_v44  ;;  %v4411_v60 = vsel %vm3725_vm15, 4294967295, %v4410_v60  ;;  %v4412_v44 = vld [vmem:[#allocation13_spill] sm:$0xff]  ;;  %v1512_v43 = vand.u32 4294901760, %v1511_v36 }
 0x15a   :  { %v3714_v53 = vadd.f32 %v1663_v58, %v1371_v59  ;;  %2502 = vmatmul.msk.f32.gmra.mxu3 %vm3654_vm2, %v4376_v20  ;;  %v4280_v58 = vand.u32 4294901760, %v3712_v57  ;;  %vm3748_vm2 = vmor %vm141_vm5, %vm241_vm11  ;;  %vm142_vm11 = vcmp.eq.s32.totalorder %v113_v4, %v3202_v5  ;;  %v4422_v4 = vld [vmem:[#allocation19_spill] sm:$0xff] }
 0x15b   :  { %v1119_v23 = vpop.f32.mrf.mxu0 }
 0x15c   :  { %4408 = vst [vmem:[#allocation12_spill] sm:$0xff] %v3714_v53  ;;  %v1120_v25 = vadd.f32 %v1119_v23, %v4409_v22  ;;  %v1237_v19 = vpop.f32.mrf.mxu1  ;;  %v1378_v18 = vpop.f32.mrf.mxu2  ;;  %v2480_v23 = vsel %vm3725_vm15, 1.0, %v4381_v17  ;;  %v1519_v22 = vsub.f32 %v3712_v57, %v4280_v58 }
 0x15d   :  { %v1667_v59 = vpop.f32.mrf.mxu3  ;;  %v3745_v36 = vsub.f32 %v2480_v23, %v2480_v23  ;;  %v213_v58 = vpop.permute.xlu2 %212  ;;  %v2481_v23 = vsel %vm3748_vm2, 1.0, %v4381_v17 }
 0x15e   :  { %v1238_v46 = vadd.f32 %v1237_v19, %v1120_v25  ;;  %1182 = vmatmul.f32.gmra.mxu0 %v4412_v44  ;;  %v4415_v19 = vld [vmem:[#allocation18_spill] sm:$0xff]  ;;  %vm242_vm5 = vcmp.eq.s32.totalorder %v213_v58, %v3202_v5 }
 0x15f   :  { %1300 = vmatmul.f32.gmra.mxu1 %v4412_v44  ;;  %4414 = vst [vmem:[#allocation13_spill] sm:$0xff] %v3745_v36  ;;  %v4289_v35 = vand.u32 4294901760, %v3745_v36 }
 0x160   :  { %v1379_v30 = vadd.f32 %v1378_v18, %v1238_v46 }
 0x161   :  { %1513 = vmatmul.f32.gmra.mxu2 %v1512_v43  ;;  %v1527_v58 = vsub.f32 %v3745_v36, %v4289_v35 }
 0x162   :  { %v3738_v53 = vadd.f32 %v1667_v59, %v1379_v30  ;;  %2503 = vmatmul.msk.f32.gmra.mxu3 %vm3679_vm9, %v4376_v20  ;;  %v1520_v59 = vand.u32 4294901760, %v1519_v22  ;;  %v3765_v22 = vsub.f32 %v2481_v23, %v2481_v23  ;;  %vm3767_vm9 = vmor %vm142_vm11, %vm242_vm5  ;;  %v4423_v23 = vld [vmem:[#allocation16_spill] sm:$0xff] }
 0x163   :  { %v1123_v25 = vpop.f32.mrf.mxu0  ;;  %v1528_v13 = vand.u32 4294901760, %v1527_v58 }
 0x164   :  { %4413 = vst [vmem:[#allocation17_spill] sm:$0xff] %v3738_v53  ;;  %v1124_v18 = vadd.f32 %v1123_v25, %v4415_v19  ;;  %v1241_v46 = vpop.f32.mrf.mxu1  ;;  %v1386_v44 = vpop.f32.mrf.mxu2  ;;  %v1534_v53 = vand.u32 4294901760, %v3765_v22 }
 0x165   :  { %v1671_v30 = vpop.f32.mrf.mxu3  ;;  %v116_v19 = vpop.permute.xlu1 %115 }
 0x166   :  { %v1242_v57 = vadd.f32 %v1241_v46, %v1124_v18  ;;  %1186 = vmatmul.f32.gmra.mxu0 %v4418_v26  ;;  %vm143_vm11 = vcmp.eq.s32.totalorder %v116_v19, %v3202_v5  ;;  %v1535_v58 = vsub.f32 %v3765_v22, %v1534_v53 }
 0x167   :  { %1304 = vmatmul.f32.gmra.mxu1 %v4418_v26 }
 0x168   :  { %v1387_v29 = vadd.f32 %v1386_v44, %v1242_v57  ;;  %v1536_v19 = vand.u32 4294901760, %v1535_v58 }
 0x169   :  { %1521 = vmatmul.f32.gmra.mxu2 %v1520_v59 }
 0x16a   :  { %v3760_v25 = vadd.f32 %v1671_v30, %v1387_v29  ;;  %2504 = vmatmul.msk.f32.gmra.mxu3 %vm3701_vm14, %v4376_v20  ;;  %v2482_v29 = vsel %vm3767_vm9, 1.0, %v4381_v17 }
 0x16b   :  { %v1127_v26 = vpop.f32.mrf.mxu0  ;;  %v3781_v36 = vsub.f32 %v2482_v29, %v2482_v29 }
 0x16c   :  { %4419 = vst [vmem:[#allocation18_spill] sm:$0xff] %v3760_v25  ;;  %v1128_v18 = vadd.f32 %v1127_v26, %v4422_v4  ;;  %v1245_v46 = vpop.f32.mrf.mxu1  ;;  %v1394_v44 = vpop.f32.mrf.mxu2 }
 0x16d   :  { %v1675_v30 = vpop.f32.mrf.mxu3  ;;  %v216_v25 = vpop.permute.xlu2 %215 }
 0x16e   :  { %v1246_v59 = vadd.f32 %v1245_v46, %v1128_v18  ;;  %1190 = vmatmul.f32.gmra.mxu0 %v4423_v23  ;;  %vm243_vm5 = vcmp.eq.s32.totalorder %v216_v25, %v3202_v5  ;;  %v219_v18 = vpop.permute.xlu1 %218  ;;  %v119_v25 = vpop.permute.xlu0 %118 }
 0x16f   :  { %1308 = vmatmul.f32.gmra.mxu1 %v4423_v23  ;;  %vm3794_vm14 = vmor %vm143_vm11, %vm243_vm5  ;;  %vm244_vm5 = vcmp.eq.s32.totalorder %v219_v18, %v3202_v5  ;;  %vm144_vm11 = vcmp.eq.s32.totalorder %v119_v25, %v3202_v5 }
 0x170   :  { %v1395_v35 = vadd.f32 %v1394_v44, %v1246_v59  ;;  %v4296_v59 = vand.u32 4294901760, %v3781_v36 }
 0x171   :  { %1529 = vmatmul.f32.gmra.mxu2 %v1528_v13 }
 0x172   :  { %v3783_v26 = vadd.f32 %v1675_v30, %v1395_v35  ;;  %2505 = vmatmul.msk.f32.gmra.mxu3 %vm3725_vm15, %v4376_v20  ;;  %vm3816_vm15 = vmor %vm144_vm11, %vm244_vm5  ;;  %vm4486_vm5 = vnez %v4411_v60 }
 0x173   :  { %v1131_v4 = vpop.f32.mrf.mxu0 }
 0x174   :  { %v1132_v46 = vadd.f32 %v1131_v4, %v3183_v62  ;;  %v1249_v44 = vpop.f32.mrf.mxu1  ;;  %v1402_v13 = vpop.f32.mrf.mxu2  ;;  %v2483_v62 = vsel %vm3794_vm14, 1.0, %v4381_v17  ;;  %v1543_v4 = vsub.f32 %v3781_v36, %v4296_v59 }
 0x175   :  { %v1679_v30 = vpop.f32.mrf.mxu3 }
 0x176   :  { %v1250_v29 = vadd.f32 %v1249_v44, %v1132_v46  ;;  %1194 = vmatmul.f32.gmra.mxu0 %v3104_v31 }
 0x177   :  { %1312 = vmatmul.f32.gmra.mxu1 %v3104_v31  ;;  %v3814_v31 = vsub.f32 %v2483_v62, %v2483_v62 }
 0x178   :  { %v1403_v23 = vadd.f32 %v1402_v13, %v1250_v29  ;;  %v1544_v29 = vand.u32 4294901760, %v1543_v4 }
 0x179   :  { %1537 = vmatmul.f32.gmra.mxu2 %v1536_v19 }
 0x17a   :  { %v3809_v46 = vadd.f32 %v1679_v30, %v1403_v23  ;;  %2506 = vmatmul.msk.f32.gmra.mxu3 %vm3748_vm2, %v4376_v20  ;;  %v2484_v30 = vsel %vm3816_vm15, 1.0, %v4381_v17  ;;  %v4297_v23 = vand.u32 4294901760, %v3814_v31 }
 0x17b   :  { %v1135_v58 = vpop.f32.mrf.mxu0  ;;  %v3827_v59 = vsub.f32 %v2484_v30, %v2484_v30 }
 0x17c   :  { %v1136_v5 = vadd.f32 %v1135_v58, %v3212_v15  ;;  %v1253_v18 = vpop.f32.mrf.mxu1  ;;  %v1410_v13 = vpop.f32.mrf.mxu2  ;;  %v1551_v58 = vsub.f32 %v3814_v31, %v4297_v23 }
 0x17d   :  { %v1683_v25 = vpop.f32.mrf.mxu3 }
 0x17e   :  { %v1254_v19 = vadd.f32 %v1253_v18, %v1136_v5  ;;  %1198 = vmatmul.f32.gmra.mxu0 %v3128_v24 }
 0x17f   :  { %1316 = vmatmul.f32.gmra.mxu1 %v3128_v24 }
 0x180   :  { %v1411_v62 = vadd.f32 %v1410_v13, %v1254_v19  ;;  %v1558_v13 = vand.u32 4294901760, %v3827_v59 }
 0x181   :  { %1545 = vmatmul.f32.gmra.mxu2 %v1544_v29 }
 0x182   :  { %v3829_v15 = vadd.f32 %v1683_v25, %v1411_v62  ;;  %2507 = vmatmul.msk.f32.gmra.mxu3 %vm3767_vm9, %v4376_v20  ;;  %v1552_v25 = vand.u32 4294901760, %v1551_v58  ;;  %v1559_v30 = vsub.f32 %v3827_v59, %v1558_v13 }
 0x183   :  { %v1139_v4 = vpop.f32.mrf.mxu0 }
 0x184   :  { %v1140_v17 = vadd.f32 %v1139_v4, %v3247_v33  ;;  %v1257_v24 = vpop.f32.mrf.mxu1  ;;  %v1418_v5 = vpop.f32.mrf.mxu2 }
 0x185   :  { %v1687_v18 = vpop.f32.mrf.mxu3 }
 0x186   :  { %v1258_v29 = vadd.f32 %v1257_v24, %v1140_v17  ;;  %1202 = vmatmul.f32.gmra.mxu0 %v3152_v21 }
 0x187   :  { %1320 = vmatmul.f32.gmra.mxu1 %v3152_v21  ;;  %v1560_v21 = vand.u32 4294901760, %v1559_v30 }
 0x188   :  { %v1419_v19 = vadd.f32 %v1418_v5, %v1258_v29 }
 0x189   :  { %1553 = vmatmul.f32.gmra.mxu2 %v1552_v25 }
 0x18a   :  { %v3844_v62 = vadd.f32 %v1687_v18, %v1419_v19  ;;  %2508 = vmatmul.msk.f32.gmra.mxu3 %vm3794_vm14, %v4376_v20 }
 0x18b   :  { %v1143_v33 = vpop.f32.mrf.mxu0 }
 0x18c   :  { %v1144_v4 = vadd.f32 %v1143_v33, %v3282_v41  ;;  %v1261_v17 = vpop.f32.mrf.mxu1  ;;  %v1426_v24 = vpop.f32.mrf.mxu2 }
 0x18d   :  { %v1691_v23 = vpop.f32.mrf.mxu3 }
 0x18e   :  { %v1262_v58 = vadd.f32 %v1261_v17, %v1144_v4  ;;  %1206 = vmatmul.f32.gmra.mxu0 %v3185_v34 }
 0x18f   :  { %1324 = vmatmul.f32.gmra.mxu1 %v3185_v34 }
 0x190   :  { %v1427_v5 = vadd.f32 %v1426_v24, %v1262_v58 }
 0x191   :  { %1561 = vmatmul.f32.gmra.mxu2 %v1560_v21 }
 0x192   :  { %v3852_v18 = vadd.f32 %v1691_v23, %v1427_v5  ;;  %2509 = vmatmul.msk.f32.gmra.mxu3 %vm3816_vm15, %v4376_v20 }
 0x193   :  { %v1147_v29 = vpop.f32.mrf.mxu0 }
 0x194   :  { %v1148_v41 = vadd.f32 %v1147_v29, %v3318_v39  ;;  %v1265_v25 = vpop.f32.mrf.mxu1  ;;  %v1434_v19 = vpop.f32.mrf.mxu2 }
 0x195   :  { %v1695_v33 = vpop.f32.mrf.mxu3 }
 0x196   :  { %v1266_v30 = vadd.f32 %v1265_v25, %v1148_v41  ;;  %1210 = vmatmul.f32.gmra.mxu0 %v3218_v16 }
 0x197   :  { %1328 = vmatmul.f32.gmra.mxu1 %v3218_v16  ;;  %v4428_v16 = vand.u32 4294901760, %v3255_v7 }
 0x198   :  { %v1435_v34 = vadd.f32 %v1434_v19, %v1266_v30 }
 0x199   :  { %2510 = vmatmul.msk.f32.vlgmr.msra.gmra.mxu2 %vm3233_vm4, %v4376_v20 }
 0x19a   :  { %v3863_v23 = vadd.f32 %v1695_v33, %v1435_v34  ;;  %2535 = vmatmul.msk.f32.vlgmr.msra.gmra.mxu3 %vm3233_vm4, %v4376_v20  ;;  %vm4438_vm4 = vnez %v4353_v28 }
 0x19b   :  { %v1151_v39 = vpop.f32.mrf.mxu0 }
 0x19c   :  { %v1152_v4 = vadd.f32 %v1151_v39, %v3348_v48  ;;  %v1269_v17 = vpop.f32.mrf.mxu1  ;;  %v1442_v24 = vpop.f32.mrf.mxu2 }
 0x19d   :  { %v1699_v21 = vpop.f32.mrf.mxu3 }
 0x19e   :  { %v1270_v58 = vadd.f32 %v1269_v17, %v1152_v4  ;;  %1812 = vmatmul.f32.vlgmr.msra.gmra.mxu0 %v3255_v7  ;;  %v4429_v7 = vand.u32 4294901760, %v3289_v12 }
 0x19f   :  { %1971 = vmatmul.f32.vlgmr.msra.gmra.mxu1 %v4428_v16 }
 0x1a0   :  { %v1443_v5 = vadd.f32 %v1442_v24, %v1270_v58 }
 0x1a1   :  { %2511 = vmatmul.msk.f32.gmra.mxu2 %vm3267_vm7, %v4376_v20 }
 0x1a2   :  { %v3875_v29 = vadd.f32 %v1699_v21, %v1443_v5  ;;  %2536 = vmatmul.msk.f32.gmra.mxu3 %vm3267_vm7, %v4376_v20 }
 0x1a3   :  { %v1155_v40 = vpop.f32.mrf.mxu0 }
 0x1a4   :  { %v1156_v48 = vadd.f32 %v1155_v40, %v3373_v3  ;;  %v1273_v41 = vpop.f32.mrf.mxu1  ;;  %v1450_v25 = vpop.f32.mrf.mxu2 }
 0x1a5   :  { %v1703_v19 = vpop.f32.mrf.mxu3 }
 0x1a6   :  { %v1274_v33 = vadd.f32 %v1273_v41, %v1156_v48  ;;  %1817 = vmatmul.f32.gmra.mxu0 %v3289_v12  ;;  %v4430_v12 = vand.u32 4294901760, %v3328_v11 }
 0x1a7   :  { %1977 = vmatmul.f32.gmra.mxu1 %v4429_v7 }
 0x1a8   :  { %v1451_v30 = vadd.f32 %v1450_v25, %v1274_v33 }
 0x1a9   :  { %2512 = vmatmul.msk.f32.gmra.mxu2 %vm3302_vm10, %v4376_v20 }
 0x1aa   :  { %v3887_v34 = vadd.f32 %v1703_v19, %v1451_v30  ;;  %2537 = vmatmul.msk.f32.gmra.mxu3 %vm3302_vm10, %v4376_v20 }
 0x1ab   :  { %v1159_v47 = vpop.f32.mrf.mxu0 }
 0x1ac   :  { %v1160_v3 = vadd.f32 %v1159_v47, %v3398_v32  ;;  %v1277_v39 = vpop.f32.mrf.mxu1  ;;  %v1458_v4 = vpop.f32.mrf.mxu2 }
 0x1ad   :  { %v1707_v17 = vpop.f32.mrf.mxu3 }
 0x1ae   :  { %v1278_v24 = vadd.f32 %v1277_v39, %v1160_v3  ;;  %1822 = vmatmul.f32.gmra.mxu0 %v3328_v11  ;;  %v4431_v11 = vand.u32 4294901760, %v3356_v52 }
 0x1af   :  { %1983 = vmatmul.f32.gmra.mxu1 %v4430_v12 }
 0x1b0   :  { %v1459_v21 = vadd.f32 %v1458_v4, %v1278_v24 }
 0x1b1   :  { %2513 = vmatmul.msk.f32.gmra.mxu2 %vm3335_vm13, %v4376_v20 }
 0x1b2   :  { %v3899_v58 = vadd.f32 %v1707_v17, %v1459_v21  ;;  %2538 = vmatmul.msk.f32.gmra.mxu3 %vm3335_vm13, %v4376_v20 }
 0x1b3   :  { %v1163_v63 = vpop.f32.mrf.mxu0 }
 0x1b4   :  { %v1164_v32 = vadd.f32 %v1163_v63, %v3423_v45  ;;  %v1281_v16 = vpop.f32.mrf.mxu1  ;;  %v1466_v5 = vpop.f32.mrf.mxu2 }
 0x1b5   :  { %v1711_v40 = vpop.f32.mrf.mxu3 }
 0x1b6   :  { %v1282_v48 = vadd.f32 %v1281_v16, %v1164_v32  ;;  %1827 = vmatmul.f32.gmra.mxu0 %v3356_v52  ;;  %v4432_v52 = vand.u32 4294901760, %v3375_v50 }
 0x1b7   :  { %1989 = vmatmul.f32.gmra.mxu1 %v4431_v11 }
 0x1b8   :  { %v1467_v41 = vadd.f32 %v1466_v5, %v1282_v48 }
 0x1b9   :  { %2514 = vmatmul.msk.f32.gmra.mxu2 %vm3361_vm0, %v4376_v20 }
 0x1ba   :  { %v3911_v25 = vadd.f32 %v1711_v40, %v1467_v41  ;;  %2539 = vmatmul.msk.f32.gmra.mxu3 %vm3361_vm0, %v4376_v20 }
 0x1bb   :  { %v1167_v38 = vpop.f32.mrf.mxu0 }
 0x1bc   :  { %v1168_v45 = vadd.f32 %v1167_v38, %v3446_v51  ;;  %v1285_v19 = vpop.f32.mrf.mxu1  ;;  %v1474_v33 = vpop.f32.mrf.mxu2 }
 0x1bd   :  { %v1715_v7 = vpop.f32.mrf.mxu3 }
 0x1be   :  { %v1286_v30 = vadd.f32 %v1285_v19, %v1168_v45  ;;  %1832 = vmatmul.f32.gmra.mxu0 %v3375_v50  ;;  %v4433_v50 = vand.u32 4294901760, %v3408_v27 }
 0x1bf   :  { %1995 = vmatmul.f32.gmra.mxu1 %v4432_v52 }
 0x1c0   :  { %v1475_v47 = vadd.f32 %v1474_v33, %v1286_v30 }
 0x1c1   :  { %2515 = vmatmul.msk.f32.gmra.mxu2 %vm3388_vm3, %v4376_v20 }
 0x1c2   :  { %v3923_v3 = vadd.f32 %v1715_v7, %v1475_v47  ;;  %2540 = vmatmul.msk.f32.gmra.mxu3 %vm3388_vm3, %v4376_v20 }
 0x1c3   :  { %v1171_v0 = vpop.f32.mrf.mxu0 }
 0x1c4   :  { %v1172_v51 = vadd.f32 %v1171_v0, %v3471_v55  ;;  %v1289_v39 = vpop.f32.mrf.mxu1  ;;  %v1482_v4 = vpop.f32.mrf.mxu2 }
 0x1c5   :  { %v1719_v17 = vpop.f32.mrf.mxu3 }
 0x1c6   :  { %v1290_v24 = vadd.f32 %v1289_v39, %v1172_v51  ;;  %1837 = vmatmul.f32.gmra.mxu0 %v3408_v27  ;;  %v4434_v27 = vand.u32 4294901760, %v3431_v9 }
 0x1c7   :  { %2001 = vmatmul.f32.gmra.mxu1 %v4433_v50 }
 0x1c8   :  { %v1483_v12 = vadd.f32 %v1482_v4, %v1290_v24 }
 0x1c9   :  { %2516 = vmatmul.msk.f32.gmra.mxu2 %vm3411_vm8, %v4376_v20 }
 0x1ca   :  { %v3935_v21 = vadd.f32 %v1719_v17, %v1483_v12  ;;  %2541 = vmatmul.msk.f32.gmra.mxu3 %vm3411_vm8, %v4376_v20 }
 0x1cb   :  { %v1175_v2 = vpop.f32.mrf.mxu0 }
 0x1cc   :  { %v1176_v55 = vadd.f32 %v1175_v2, %v3491_v61  ;;  %v1293_v63 = vpop.f32.mrf.mxu1  ;;  %v1490_v32 = vpop.f32.mrf.mxu2 }
 0x1cd   :  { %v1723_v16 = vpop.f32.mrf.mxu3 }
 0x1ce   :  { %v1294_v5 = vadd.f32 %v1293_v63, %v1176_v55  ;;  %1842 = vmatmul.f32.gmra.mxu0 %v3431_v9  ;;  %v4435_v9 = vand.u32 4294901760, %v3448_v54 }
 0x1cf   :  { %2007 = vmatmul.f32.gmra.mxu1 %v4434_v27 }
 0x1d0   :  { %v1491_v40 = vadd.f32 %v1490_v32, %v1294_v5 }
 0x1d1   :  { %2517 = vmatmul.msk.f32.gmra.mxu2 %vm3433_vm12, %v4376_v20 }
 0x1d2   :  { %v3947_v48 = vadd.f32 %v1723_v16, %v1491_v40  ;;  %2542 = vmatmul.msk.f32.gmra.mxu3 %vm3433_vm12, %v4376_v20  ;;  %v4442_v40 = vld [vmem:[#allocation21_spill] sm:$0xff] }
 0x1d3   :  { %v1179_v1 = vpop.f32.mrf.mxu0  ;;  %vm4443_vm7 = vnez %v4442_v40  ;;  %v4457_v40 = vld [vmem:[#allocation26_spill] sm:$0xff] }
 0x1d4   :  { %v1180_v61 = vadd.f32 %v1179_v1, %v3513_v42  ;;  %v1297_v11 = vpop.f32.mrf.mxu1  ;;  %v1498_v41 = vpop.f32.mrf.mxu2  ;;  %vm4458_vm0 = vnez %v4457_v40  ;;  %v4470_v40 = vld [vmem:[#allocation31_spill] sm:$0xff] }
 0x1d5   :  { %v1727_v38 = vpop.f32.mrf.mxu3 }
 0x1d6   :  { %v1298_v45 = vadd.f32 %v1297_v11, %v1180_v61  ;;  %1847 = vmatmul.f32.gmra.mxu0 %v3448_v54  ;;  %v4436_v54 = vand.u32 4294901760, %v3479_v8  ;;  %v4444_v61 = vld [vmem:[#allocation7_spill] sm:$0xff] }
 0x1d7   :  { %2013 = vmatmul.f32.gmra.mxu1 %v4435_v9 }
 0x1d8   :  { %v1499_v19 = vadd.f32 %v1498_v41, %v1298_v45 }
 0x1d9   :  { %2518 = vmatmul.msk.f32.gmra.mxu2 %vm3459_vm1, %v4376_v20 }
 0x1da   :  { %v3959_v33 = vadd.f32 %v1727_v38, %v1499_v19  ;;  %2543 = vmatmul.msk.f32.gmra.mxu3 %vm3459_vm1, %v4376_v20  ;;  %v4445_v19 = vld [vmem:[#allocation22_spill] sm:$0xff] }
 0x1db   :  { %v1183_v49 = vpop.f32.mrf.mxu0 }
 0x1dc   :  { %v1184_v42 = vadd.f32 %v1183_v49, %v3537_v14  ;;  %v1301_v7 = vpop.f32.mrf.mxu1  ;;  %v1506_v30 = vpop.f32.mrf.mxu2  ;;  %v4446_v49 = vand.u32 4294901760, %v4445_v19 }
 0x1dd   :  { %v1731_v52 = vpop.f32.mrf.mxu3 }
 0x1de   :  { %v1302_v47 = vadd.f32 %v1301_v7, %v1184_v42  ;;  %1852 = vmatmul.f32.gmra.mxu0 %v3479_v8  ;;  %v4437_v8 = vand.u32 4294901760, %v3493_v37  ;;  %v4447_v7 = vld [vmem:[#allocation23_spill] sm:$0xff] }
 0x1df   :  { %2019 = vmatmul.f32.gmra.mxu1 %v4436_v54  ;;  %vm4448_vm10 = vnez %v4447_v7 }
 0x1e0   :  { %v1507_v0 = vadd.f32 %v1506_v30, %v1302_v47  ;;  %v4449_v47 = vld [vmem:[#allocation8_spill] sm:$0xff] }
 0x1e1   :  { %2519 = vmatmul.msk.f32.gmra.mxu2 %vm3481_vm6, %v4376_v20 }
 0x1e2   :  { %v3971_v51 = vadd.f32 %v1731_v52, %v1507_v0  ;;  %2544 = vmatmul.msk.f32.gmra.mxu3 %vm3481_vm6, %v4376_v20 }
 0x1e3   :  { %v1187_v56 = vpop.f32.mrf.mxu0 }
 0x1e4   :  { %v1188_v14 = vadd.f32 %v1187_v56, %v3557_v6  ;;  %v1305_v39 = vpop.f32.mrf.mxu1  ;;  %v1514_v4 = vpop.f32.mrf.mxu2 }
 0x1e5   :  { %v1735_v17 = vpop.f32.mrf.mxu3 }
 0x1e6   :  { %v1306_v24 = vadd.f32 %v1305_v39, %v1188_v14  ;;  %1857 = vmatmul.f32.gmra.mxu0 %v3493_v37  ;;  %v4440_v37 = vld [vmem:[#allocation20_spill] sm:$0xff] }
 0x1e7   :  { %2025 = vmatmul.f32.gmra.mxu1 %v4437_v8  ;;  %v4441_v5 = vand.u32 4294901760, %v4440_v37  ;;  %v4452_v8 = vld [vmem:[#allocation24_spill] sm:$0xff] }
 0x1e8   :  { %v1515_v50 = vadd.f32 %v1514_v4, %v1306_v24  ;;  %v4450_v4 = vld [vmem:[#allocation5_spill] sm:$0xff]  ;;  %vm4453_vm13 = vnez %v4452_v8 }
 0x1e9   :  { %2520 = vmatmul.msk.f32.gmra.mxu2 %vm4438_vm4, %v4376_v20 }
 0x1ea   :  { %v3983_v12 = vadd.f32 %v1735_v17, %v1515_v50  ;;  %2545 = vmatmul.msk.f32.gmra.mxu3 %vm4438_vm4, %v4376_v20  ;;  %v4451_v17 = vand.u32 4294901760, %v4450_v4 }
 0x1eb   :  { %v1191_v6 = vpop.f32.mrf.mxu0 }
 0x1ec   :  { %v1192_v2 = vadd.f32 %v1191_v6, %v4439_v10  ;;  %v1309_v55 = vpop.f32.mrf.mxu1  ;;  %v1522_v63 = vpop.f32.mrf.mxu2  ;;  %v4454_v10 = vld [vmem:[#allocation9_spill] sm:$0xff] }
 0x1ed   :  { %v1739_v32 = vpop.f32.mrf.mxu3 }
 0x1ee   :  { %v1310_v16 = vadd.f32 %v1309_v55, %v1192_v2  ;;  %1862 = vmatmul.f32.gmra.mxu0 %v4440_v37  ;;  %v4455_v37 = vld [vmem:[#allocation25_spill] sm:$0xff] }
 0x1ef   :  { %2031 = vmatmul.f32.gmra.mxu1 %v4441_v5  ;;  %v4456_v5 = vand.u32 4294901760, %v4455_v37 }
 0x1f0   :  { %v1523_v27 = vadd.f32 %v1522_v63, %v1310_v16 }
 0x1f1   :  { %2521 = vmatmul.msk.f32.gmra.mxu2 %vm4443_vm7, %v4376_v20 }
 0x1f2   :  { %v3995_v1 = vadd.f32 %v1739_v32, %v1523_v27  ;;  %2546 = vmatmul.msk.f32.gmra.mxu3 %vm4443_vm7, %v4376_v20 }
 0x1f3   :  { %v1195_v28 = vpop.f32.mrf.mxu0 }
 0x1f4   :  { %v1196_v11 = vadd.f32 %v1195_v28, %v4444_v61  ;;  %v1313_v41 = vpop.f32.mrf.mxu1  ;;  %v1530_v38 = vpop.f32.mrf.mxu2 }
 0x1f5   :  { %v1743_v45 = vpop.f32.mrf.mxu3 }
 0x1f6   :  { %v1314_v9 = vadd.f32 %v1313_v41, %v1196_v11  ;;  %1867 = vmatmul.f32.gmra.mxu0 %v4445_v19  ;;  %v4459_v11 = vld [vmem:[#allocation10_spill] sm:$0xff] }
 0x1f7   :  { %2037 = vmatmul.f32.gmra.mxu1 %v4446_v49  ;;  %v4460_v49 = vld [vmem:[#allocation27_spill] sm:$0xff] }
 0x1f8   :  { %v1531_v42 = vadd.f32 %v1530_v38, %v1314_v9 }
 0x1f9   :  { %2522 = vmatmul.msk.f32.gmra.mxu2 %vm4448_vm10, %v4376_v20 }
 0x1fa   :  { %v4007_v30 = vadd.f32 %v1743_v45, %v1531_v42  ;;  %2547 = vmatmul.msk.f32.gmra.mxu3 %vm4448_vm10, %v4376_v20  ;;  %v4461_v42 = vand.u32 4294901760, %v4460_v49 }
 0x1fb   :  { %v1199_v52 = vpop.f32.mrf.mxu0 }
 0x1fc   :  { %v1200_v54 = vadd.f32 %v1199_v52, %v4449_v47  ;;  %v1317_v0 = vpop.f32.mrf.mxu1  ;;  %v1538_v56 = vpop.f32.mrf.mxu2  ;;  %v4462_v52 = vld [vmem:[#allocation28_spill] sm:$0xff] }
 0x1fd   :  { %v1747_v14 = vpop.f32.mrf.mxu3  ;;  %vm4463_vm3 = vnez %v4462_v52 }
 0x1fe   :  { %v1318_v39 = vadd.f32 %v1317_v0, %v1200_v54  ;;  %1872 = vmatmul.f32.gmra.mxu0 %v4450_v4  ;;  %v4464_v0 = vld [vmem:[#allocation11_spill] sm:$0xff] }
 0x1ff   :  { %2043 = vmatmul.f32.gmra.mxu1 %v4451_v17 }
 0x200   :  { %v1539_v24 = vadd.f32 %v1538_v56, %v1318_v39 }
 0x201   :  { %2523 = vmatmul.msk.f32.gmra.mxu2 %vm4453_vm13, %v4376_v20 }
 0x202   :  { %v4019_v50 = vadd.f32 %v1747_v14, %v1539_v24  ;;  %2548 = vmatmul.msk.f32.gmra.mxu3 %vm4453_vm13, %v4376_v20  ;;  %v4465_v24 = vld [vmem:[#allocation29_spill] sm:$0xff] }
 0x203   :  { %v1203_v6 = vpop.f32.mrf.mxu0  ;;  %v4466_v8 = vand.u32 4294901760, %v4465_v24 }
 0x204   :  { %v1204_v2 = vadd.f32 %v1203_v6, %v4454_v10  ;;  %v1321_v55 = vpop.f32.mrf.mxu1  ;;  %v1546_v63 = vpop.f32.mrf.mxu2  ;;  %v4467_v10 = vld [vmem:[#allocation30_spill] sm:$0xff] }
 0x205   :  { %v1751_v32 = vpop.f32.mrf.mxu3  ;;  %vm4468_vm8 = vnez %v4467_v10 }
 0x206   :  { %v1322_v16 = vadd.f32 %v1321_v55, %v1204_v2  ;;  %1877 = vmatmul.f32.gmra.mxu0 %v4455_v37 }
 0x207   :  { %2049 = vmatmul.f32.gmra.mxu1 %v4456_v5 }
 0x208   :  { %v1547_v27 = vadd.f32 %v1546_v63, %v1322_v16  ;;  %v4469_v63 = vld [vmem:[#allocation12_spill] sm:$0xff] }
 0x209   :  { %2524 = vmatmul.msk.f32.gmra.mxu2 %vm4458_vm0, %v4376_v20 }
 0x20a   :  { %v4031_v28 = vadd.f32 %v1751_v32, %v1547_v27  ;;  %2549 = vmatmul.msk.f32.gmra.mxu3 %vm4458_vm0, %v4376_v20 }
 0x20b   :  { %v1207_v61 = vpop.f32.mrf.mxu0 }
 0x20c   :  { %v1208_v41 = vadd.f32 %v1207_v61, %v4459_v11  ;;  %v1325_v38 = vpop.f32.mrf.mxu1  ;;  %v1554_v45 = vpop.f32.mrf.mxu2  ;;  %v4471_v61 = vand.u32 4294901760, %v4470_v40 }
 0x20d   :  { %v1755_v9 = vpop.f32.mrf.mxu3 }
 0x20e   :  { %v1326_v19 = vadd.f32 %v1325_v38, %v1208_v41  ;;  %1882 = vmatmul.f32.gmra.mxu0 %v4460_v49  ;;  %v4472_v41 = vld [vmem:[#allocation32_spill] sm:$0xff] }
 0x20f   :  { %2055 = vmatmul.f32.gmra.mxu1 %v4461_v42  ;;  %vm4473_vm12 = vnez %v4472_v41 }
 0x210   :  { %v1555_v7 = vadd.f32 %v1554_v45, %v1326_v19 }
 0x211   :  { %2525 = vmatmul.msk.f32.gmra.mxu2 %vm4463_vm3, %v4376_v20 }
 0x212   :  { %v4043_v47 = vadd.f32 %v1755_v9, %v1555_v7  ;;  %2550 = vmatmul.msk.f32.gmra.mxu3 %vm4463_vm3, %v4376_v20  ;;  %v4474_v9 = vld [vmem:[#allocation17_spill] sm:$0xff] }
 0x213   :  { %v1211_v54 = vpop.f32.mrf.mxu0 }
 0x214   :  { %v1212_v56 = vadd.f32 %v1211_v54, %v4464_v0  ;;  %v1329_v14 = vpop.f32.mrf.mxu1  ;;  %v1562_v39 = vpop.f32.mrf.mxu2  ;;  %v4475_v54 = vld [vmem:[#allocation33_spill] sm:$0xff] }
 0x215   :  { %v1759_v4 = vpop.f32.mrf.mxu3  ;;  %v4476_v0 = vand.u32 4294901760, %v4475_v54 }
 0x216   :  { %v1330_v17 = vadd.f32 %v1329_v14, %v1212_v56  ;;  %1887 = vmatmul.f32.gmra.mxu0 %v4465_v24  ;;  %v4477_v14 = vld [vmem:[#allocation34_spill] sm:$0xff] }
 0x217   :  { %2061 = vmatmul.f32.gmra.mxu1 %v4466_v8  ;;  %vm4478_vm1 = vnez %v4477_v14 }
 0x218   :  { %v1563_v6 = vadd.f32 %v1562_v39, %v1330_v17  ;;  %v4479_v17 = vld [vmem:[#allocation18_spill] sm:$0xff] }
 0x219   :  { %2526 = vmatmul.msk.f32.gmra.mxu2 %vm4468_vm8, %v4376_v20 }
 0x21a   :  { %v4055_v2 = vadd.f32 %v1759_v4, %v1563_v6  ;;  %2551 = vmatmul.msk.f32.gmra.mxu3 %vm4468_vm8, %v4376_v20 }
 0x21b   :  { %v1813_v55 = vpop.f32.mrf.mxu0 }
 0x21c   :  { %v1814_v32 = vadd.f32 %v1813_v55, %v4469_v63  ;;  %v1972_v16 = vpop.f32.mrf.mxu1  ;;  %v2185_v37 = vpop.f32.mrf.mxu2  ;;  %v4480_v63 = vld [vmem:[#allocation35_spill] sm:$0xff] }
 0x21d   :  { %v2318_v5 = vpop.f32.mrf.mxu3 }
 0x21e   :  { %v1973_v27 = vadd.f32 %v1972_v16, %v1814_v32  ;;  %1892 = vmatmul.f32.gmra.mxu0 %v4470_v40  ;;  %v4481_v32 = vand.u32 4294901760, %v4480_v63 }
 0x21f   :  { %2067 = vmatmul.f32.gmra.mxu1 %v4471_v61 }
 0x220   :  { %v2186_v11 = vadd.f32 %v2185_v37, %v1973_v27  ;;  %v4482_v37 = vld [vmem:[#allocation36_spill] sm:$0xff] }
 0x221   :  { %2527 = vmatmul.msk.f32.gmra.mxu2 %vm4473_vm12, %v4376_v20  ;;  %vm4483_vm6 = vnez %v4482_v37 }
 0x222   :  { %v2319_v38 = vadd.f32 %v2318_v5, %v2186_v11  ;;  %2552 = vmatmul.msk.f32.gmra.mxu3 %vm4473_vm12, %v4376_v20 }
 0x223   :  { %v1818_v45 = vpop.f32.mrf.mxu0 }
 0x224   :  { %2417 = vst [vmem:[#allocation2] sm:$0xff] %v2319_v38  ;;  %v1819_v19 = vadd.f32 %v1818_v45, %v4474_v9  ;;  %v1978_v49 = vpop.f32.mrf.mxu1  ;;  %v2189_v42 = vpop.f32.mrf.mxu2  ;;  %v4484_v45 = vld [vmem:[#allocation15_spill] sm:$0xff] }
 0x225   :  { %v2322_v7 = vpop.f32.mrf.mxu3  ;;  %v4485_v9 = vand.u32 4294901760, %v4484_v45 }
 0x226   :  { %v1979_v52 = vadd.f32 %v1978_v49, %v1819_v19  ;;  %1897 = vmatmul.f32.gmra.mxu0 %v4475_v54 }
 0x227   :  { %2073 = vmatmul.f32.gmra.mxu1 %v4476_v0 }
 0x228   :  { %v2190_v56 = vadd.f32 %v2189_v42, %v1979_v52 }
 0x229   :  { %2528 = vmatmul.msk.f32.gmra.mxu2 %vm4478_vm1, %v4376_v20 }
 0x22a   :  { %v2323_v39 = vadd.f32 %v2322_v7, %v2190_v56  ;;  %2553 = vmatmul.msk.f32.gmra.mxu3 %vm4478_vm1, %v4376_v20  ;;  %v4487_v56 = vld [vmem:[#allocation13_spill] sm:$0xff] }
 0x22b   :  { %v1823_v4 = vpop.f32.mrf.mxu0  ;;  %v4488_v14 = vand.u32 4294901760, %v4487_v56 }
 0x22c   :  { %2418 = vst [vmem:[#allocation2 + $0x8] sm:$0xff] %v2323_v39  ;;  %v1824_v24 = vadd.f32 %v1823_v4, %v4479_v17  ;;  %v1984_v8 = vpop.f32.mrf.mxu1  ;;  %v2193_v6 = vpop.f32.mrf.mxu2 }
 0x22d   :  { %v2326_v10 = vpop.f32.mrf.mxu3 }
 0x22e   :  { %v1985_v55 = vadd.f32 %v1984_v8, %v1824_v24  ;;  %1902 = vmatmul.f32.gmra.mxu0 %v4480_v63 }
 0x22f   :  { %2079 = vmatmul.f32.gmra.mxu1 %v4481_v32 }
 0x230   :  { %v2194_v16 = vadd.f32 %v2193_v6, %v1985_v55 }
 0x231   :  { %2529 = vmatmul.msk.f32.gmra.mxu2 %vm4483_vm6, %v4376_v20 }
 0x232   :  { %v2327_v5 = vadd.f32 %v2326_v10, %v2194_v16  ;;  %2554 = vmatmul.msk.f32.gmra.mxu3 %vm4483_vm6, %v4376_v20 }
 0x233   :  { %v1828_v27 = vpop.f32.mrf.mxu0 }
 0x234   :  { %2419 = vst [vmem:[#allocation2 + $0x10] sm:$0xff] %v2327_v5  ;;  %v1829_v40 = vadd.f32 %v1828_v27, %v3783_v26  ;;  %v1990_v61 = vpop.f32.mrf.mxu1  ;;  %v2197_v11 = vpop.f32.mrf.mxu2 }
 0x235   :  { %v2330_v41 = vpop.f32.mrf.mxu3 }
 0x236   :  { %v1991_v38 = vadd.f32 %v1990_v61, %v1829_v40  ;;  %1907 = vmatmul.f32.gmra.mxu0 %v4484_v45 }
 0x237   :  { %2085 = vmatmul.f32.gmra.mxu1 %v4485_v9 }
 0x238   :  { %v2198_v19 = vadd.f32 %v2197_v11, %v1991_v38 }
 0x239   :  { %2530 = vmatmul.msk.f32.gmra.mxu2 %vm4486_vm5, %v4376_v20 }
 0x23a   :  { %v2331_v49 = vadd.f32 %v2330_v41, %v2198_v19  ;;  %2555 = vmatmul.msk.f32.gmra.mxu3 %vm4486_vm5, %v4376_v20 }
 0x23b   :  { %v1833_v26 = vpop.f32.mrf.mxu0 }
 0x23c   :  { %2420 = vst [vmem:[#allocation2 + $0x18] sm:$0xff] %v2331_v49  ;;  %v1834_v42 = vadd.f32 %v1833_v26, %v3809_v46  ;;  %v1996_v7 = vpop.f32.mrf.mxu1  ;;  %v2201_v52 = vpop.f32.mrf.mxu2 }
 0x23d   :  { %v2334_v54 = vpop.f32.mrf.mxu3 }
 0x23e   :  { %v1997_v0 = vadd.f32 %v1996_v7, %v1834_v42  ;;  %1912 = vmatmul.f32.gmra.mxu0 %v4487_v56 }
 0x23f   :  { %2091 = vmatmul.f32.gmra.mxu1 %v4488_v14 }
 0x240   :  { %v2202_v39 = vadd.f32 %v2201_v52, %v1997_v0 }
 0x241   :  { %2531 = vmatmul.msk.f32.gmra.mxu2 %vm3748_vm2, %v4376_v20 }
 0x242   :  { %v2335_v60 = vadd.f32 %v2334_v54, %v2202_v39  ;;  %2556 = vmatmul.msk.f32.gmra.mxu3 %vm3748_vm2, %v4376_v20 }
 0x243   :  { %v1838_v46 = vpop.f32.mrf.mxu0 }
 0x244   :  { %2421 = vst [vmem:[#allocation2 + $0x20] sm:$0xff] %v2335_v60  ;;  %v1839_v4 = vadd.f32 %v1838_v46, %v3829_v15  ;;  %v2002_v17 = vpop.f32.mrf.mxu1  ;;  %v2205_v24 = vpop.f32.mrf.mxu2 }
 0x245   :  { %v2338_v8 = vpop.f32.mrf.mxu3 }
 0x246   :  { %v2003_v6 = vadd.f32 %v2002_v17, %v1839_v4  ;;  %1917 = vmatmul.f32.gmra.mxu0 %v3765_v22 }
 0x247   :  { %2097 = vmatmul.f32.gmra.mxu1 %v1534_v53  ;;  %v4489_v53 = vand.u32 4294901760, %v3781_v36 }
 0x248   :  { %v2206_v10 = vadd.f32 %v2205_v24, %v2003_v6 }
 0x249   :  { %2532 = vmatmul.msk.f32.gmra.mxu2 %vm3767_vm9, %v4376_v20 }
 0x24a   :  { %v2339_v43 = vadd.f32 %v2338_v8, %v2206_v10  ;;  %2557 = vmatmul.msk.f32.gmra.mxu3 %vm3767_vm9, %v4376_v20 }
 0x24b   :  { %v1843_v15 = vpop.f32.mrf.mxu0 }
 0x24c   :  { %2422 = vst [vmem:[#allocation2 + $0x28] sm:$0xff] %v2339_v43  ;;  %v1844_v55 = vadd.f32 %v1843_v15, %v3844_v62  ;;  %v2008_v63 = vpop.f32.mrf.mxu1  ;;  %v2209_v32 = vpop.f32.mrf.mxu2 }
 0x24d   :  { %v2342_v16 = vpop.f32.mrf.mxu3 }
 0x24e   :  { %v2009_v37 = vadd.f32 %v2008_v63, %v1844_v55  ;;  %1922 = vmatmul.f32.gmra.mxu0 %v3781_v36  ;;  %v4490_v36 = vand.u32 4294901760, %v3814_v31 }
 0x24f   :  { %2103 = vmatmul.f32.gmra.mxu1 %v4489_v53 }
 0x250   :  { %v2210_v22 = vadd.f32 %v2209_v32, %v2009_v37 }
 0x251   :  { %2533 = vmatmul.msk.f32.gmra.mxu2 %vm3794_vm14, %v4376_v20 }
 0x252   :  { %v2343_v57 = vadd.f32 %v2342_v16, %v2210_v22  ;;  %2558 = vmatmul.msk.f32.gmra.mxu3 %vm3794_vm14, %v4376_v20 }
 0x253   :  { %v1848_v62 = vpop.f32.mrf.mxu0 }
 0x254   :  { %2423 = vst [vmem:[#allocation2 + $0x30] sm:$0xff] %v2343_v57  ;;  %v1849_v5 = vadd.f32 %v1848_v62, %v3852_v18  ;;  %v2014_v27 = vpop.f32.mrf.mxu1  ;;  %v2213_v40 = vpop.f32.mrf.mxu2 }
 0x255   :  { %v2346_v61 = vpop.f32.mrf.mxu3 }
 0x256   :  { %v2015_v11 = vadd.f32 %v2014_v27, %v1849_v5  ;;  %1927 = vmatmul.f32.gmra.mxu0 %v3814_v31 }
 0x257   :  { %2109 = vmatmul.f32.gmra.mxu1 %v4490_v36 }
 0x258   :  { %v2214_v41 = vadd.f32 %v2213_v40, %v2015_v11 }
 0x259   :  { %2534 = vmatmul.msk.f32.gmra.mxu2 %vm3816_vm15, %v4376_v20 }
 0x25a   :  { %v2347_v35 = vadd.f32 %v2346_v61, %v2214_v41  ;;  %2559 = vmatmul.msk.f32.gmra.mxu3 %vm3816_vm15, %v4376_v20 }
 0x25b   :  { %v1853_v18 = vpop.f32.mrf.mxu0 }
 0x25c   :  { %2424 = vst [vmem:[#allocation2 + $0x38] sm:$0xff] %v2347_v35  ;;  %v1854_v38 = vadd.f32 %v1853_v18, %v3863_v23  ;;  %v2020_v45 = vpop.f32.mrf.mxu1  ;;  %v2217_v9 = vpop.f32.mrf.mxu2 }
 0x25d   :  { %v2350_v19 = vpop.f32.mrf.mxu3 }
 0x25e   :  { %v2021_v49 = vadd.f32 %v2020_v45, %v1854_v38  ;;  %1932 = vmatmul.f32.gmra.mxu0 %v3827_v59 }
 0x25f   :  { %2115 = vmatmul.f32.gmra.mxu1 %v1558_v13 }
 0x260   :  { %v2218_v31 = vadd.f32 %v2217_v9, %v2021_v49 }
 0x262   :  { %v2351_v26 = vadd.f32 %v2350_v19, %v2218_v31 }
 0x263   :  { %v1858_v42 = vpop.f32.mrf.mxu0 }
 0x264   :  { %2425 = vst [vmem:[#allocation2 + $0x40] sm:$0xff] %v2351_v26  ;;  %v1859_v44 = vadd.f32 %v1858_v42, %v3875_v29  ;;  %v2026_v20 = vpop.f32.mrf.mxu1  ;;  %v2221_v7 = vpop.f32.mrf.mxu2 }
 0x265   :  { %v2354_v52 = vpop.f32.mrf.mxu3 }
 0x266   :  { %v2027_v54 = vadd.f32 %v2026_v20, %v1859_v44 }
 0x268   :  { %v2222_v23 = vadd.f32 %v2221_v7, %v2027_v54 }
 0x26a   :  { %v2355_v0 = vadd.f32 %v2354_v52, %v2222_v23 }
 0x26b   :  { %v1863_v56 = vpop.f32.mrf.mxu0 }
 0x26c   :  { %2426 = vst [vmem:[#allocation2 + $0x48] sm:$0xff] %v2355_v0  ;;  %v1864_v14 = vadd.f32 %v1863_v56, %v3887_v34  ;;  %v2032_v39 = vpop.f32.mrf.mxu1  ;;  %v2225_v60 = vpop.f32.mrf.mxu2 }
 0x26d   :  { %v2358_v59 = vpop.f32.mrf.mxu3 }
 0x26e   :  { %v2033_v13 = vadd.f32 %v2032_v39, %v1864_v14 }
 0x270   :  { %v2226_v46 = vadd.f32 %v2225_v60, %v2033_v13 }
 0x272   :  { %v2359_v4 = vadd.f32 %v2358_v59, %v2226_v46 }
 0x273   :  { %v1868_v17 = vpop.f32.mrf.mxu0 }
 0x274   :  { %2427 = vst [vmem:[#allocation2 + $0x50] sm:$0xff] %v2359_v4  ;;  %v1869_v29 = vadd.f32 %v1868_v17, %v3899_v58  ;;  %v2038_v24 = vpop.f32.mrf.mxu1  ;;  %v2229_v8 = vpop.f32.mrf.mxu2 }
 0x275   :  { %v2362_v6 = vpop.f32.mrf.mxu3 }
 0x276   :  { %v2039_v10 = vadd.f32 %v2038_v24, %v1869_v29 }
 0x278   :  { %v2230_v43 = vadd.f32 %v2229_v8, %v2039_v10 }
 0x27a   :  { %v2363_v15 = vadd.f32 %v2362_v6, %v2230_v43 }
 0x27b   :  { %v1873_v55 = vpop.f32.mrf.mxu0 }
 0x27c   :  { %2428 = vst [vmem:[#allocation2 + $0x58] sm:$0xff] %v2363_v15  ;;  %v1874_v34 = vadd.f32 %v1873_v55, %v3911_v25  ;;  %v2044_v63 = vpop.f32.mrf.mxu1  ;;  %v2233_v32 = vpop.f32.mrf.mxu2 }
 0x27d   :  { %v2366_v16 = vpop.f32.mrf.mxu3 }
 0x27e   :  { %v2045_v37 = vadd.f32 %v2044_v63, %v1874_v34 }
 0x280   :  { %v2234_v53 = vadd.f32 %v2233_v32, %v2045_v37 }
 0x282   :  { %v2367_v22 = vadd.f32 %v2366_v16, %v2234_v53 }
 0x283   :  { %v1878_v57 = vpop.f32.mrf.mxu0 }
 0x284   :  { %2429 = vst [vmem:[#allocation2 + $0x60] sm:$0xff] %v2367_v22  ;;  %v1879_v58 = vadd.f32 %v1878_v57, %v3923_v3  ;;  %v2050_v62 = vpop.f32.mrf.mxu1  ;;  %v2237_v5 = vpop.f32.mrf.mxu2 }
 0x285   :  { %v2370_v27 = vpop.f32.mrf.mxu3 }
 0x286   :  { %v2051_v40 = vadd.f32 %v2050_v62, %v1879_v58 }
 0x288   :  { %v2238_v61 = vadd.f32 %v2237_v5, %v2051_v40 }
 0x28a   :  { %v2371_v11 = vadd.f32 %v2370_v27, %v2238_v61 }
 0x28b   :  { %v1883_v36 = vpop.f32.mrf.mxu0 }
 0x28c   :  { %2430 = vst [vmem:[#allocation2 + $0x68] sm:$0xff] %v2371_v11  ;;  %v1884_v25 = vadd.f32 %v1883_v36, %v3935_v21  ;;  %v2056_v41 = vpop.f32.mrf.mxu1  ;;  %v2241_v35 = vpop.f32.mrf.mxu2 }
 0x28d   :  { %v2374_v18 = vpop.f32.mrf.mxu3 }
 0x28e   :  { %v2057_v38 = vadd.f32 %v2056_v41, %v1884_v25 }
 0x290   :  { %v2242_v45 = vadd.f32 %v2241_v35, %v2057_v38 }
 0x292   :  { %v2375_v9 = vadd.f32 %v2374_v18, %v2242_v45 }
 0x293   :  { %v1888_v19 = vpop.f32.mrf.mxu0 }
 0x294   :  { %2431 = vst [vmem:[#allocation2 + $0x70] sm:$0xff] %v2375_v9  ;;  %v1889_v3 = vadd.f32 %v1888_v19, %v3947_v48  ;;  %v2062_v49 = vpop.f32.mrf.mxu1  ;;  %v2245_v31 = vpop.f32.mrf.mxu2 }
 0x295   :  { %v2378_v26 = vpop.f32.mrf.mxu3 }
 0x296   :  { %v2063_v42 = vadd.f32 %v2062_v49, %v1889_v3 }
 0x298   :  { %v2246_v44 = vadd.f32 %v2245_v31, %v2063_v42 }
 0x29a   :  { %v2379_v20 = vadd.f32 %v2378_v26, %v2246_v44 }
 0x29b   :  { %v1893_v7 = vpop.f32.mrf.mxu0 }
 0x29c   :  { %2432 = vst [vmem:[#allocation2 + $0x78] sm:$0xff] %v2379_v20  ;;  %v1894_v21 = vadd.f32 %v1893_v7, %v3959_v33  ;;  %v2068_v52 = vpop.f32.mrf.mxu1  ;;  %v2249_v54 = vpop.f32.mrf.mxu2 }
 0x29d   :  { %v2382_v23 = vpop.f32.mrf.mxu3 }
 0x29e   :  { %v2069_v0 = vadd.f32 %v2068_v52, %v1894_v21 }
 0x2a0   :  { %v2250_v56 = vadd.f32 %v2249_v54, %v2069_v0 }
 0x2a2   :  { %v2383_v14 = vadd.f32 %v2382_v23, %v2250_v56 }
 0x2a3   :  { %v1898_v39 = vpop.f32.mrf.mxu0 }
 0x2a4   :  { %2433 = vst [vmem:[#allocation2 + $0x80] sm:$0xff] %v2383_v14  ;;  %v1899_v48 = vadd.f32 %v1898_v39, %v3971_v51  ;;  %v2074_v60 = vpop.f32.mrf.mxu1  ;;  %v2253_v59 = vpop.f32.mrf.mxu2 }
 0x2a5   :  { %v2386_v13 = vpop.f32.mrf.mxu3 }
 0x2a6   :  { %v2075_v46 = vadd.f32 %v2074_v60, %v1899_v48 }
 0x2a8   :  { %v2254_v4 = vadd.f32 %v2253_v59, %v2075_v46 }
 0x2aa   :  { %v2387_v17 = vadd.f32 %v2386_v13, %v2254_v4 }
 0x2ab   :  { %v1903_v29 = vpop.f32.mrf.mxu0 }
 0x2ac   :  { %2434 = vst [vmem:[#allocation2 + $0x88] sm:$0xff] %v2387_v17  ;;  %v1904_v33 = vadd.f32 %v1903_v29, %v3983_v12  ;;  %v2080_v24 = vpop.f32.mrf.mxu1  ;;  %v2257_v8 = vpop.f32.mrf.mxu2 }
 0x2ad   :  { %v2390_v6 = vpop.f32.mrf.mxu3 }
 0x2ae   :  { %v2081_v10 = vadd.f32 %v2080_v24, %v1904_v33 }
 0x2b0   :  { %v2258_v43 = vadd.f32 %v2257_v8, %v2081_v10 }
 0x2b2   :  { %v2391_v15 = vadd.f32 %v2390_v6, %v2258_v43 }
 0x2b3   :  { %v1908_v55 = vpop.f32.mrf.mxu0 }
 0x2b4   :  { %2435 = vst [vmem:[#allocation2 + $0x90] sm:$0xff] %v2391_v15  ;;  %v1909_v51 = vadd.f32 %v1908_v55, %v3995_v1  ;;  %v2086_v34 = vpop.f32.mrf.mxu1  ;;  %v2261_v63 = vpop.f32.mrf.mxu2 }
 0x2b5   :  { %v2394_v32 = vpop.f32.mrf.mxu3 }
 0x2b6   :  { %v2087_v16 = vadd.f32 %v2086_v34, %v1909_v51 }
 0x2b8   :  { %v2262_v37 = vadd.f32 %v2261_v63, %v2087_v16 }
 0x2ba   :  { %v2395_v53 = vadd.f32 %v2394_v32, %v2262_v37 }
 0x2bb   :  { %v1913_v22 = vpop.f32.mrf.mxu0 }
 0x2bc   :  { %2436 = vst [vmem:[#allocation2 + $0x98] sm:$0xff] %v2395_v53  ;;  %v1914_v12 = vadd.f32 %v1913_v22, %v4007_v30  ;;  %v2092_v57 = vpop.f32.mrf.mxu1  ;;  %v2265_v58 = vpop.f32.mrf.mxu2 }
 0x2bd   :  { %v2398_v62 = vpop.f32.mrf.mxu3 }
 0x2be   :  { %v2093_v5 = vadd.f32 %v2092_v57, %v1914_v12 }
 0x2c0   :  { %v2266_v27 = vadd.f32 %v2265_v58, %v2093_v5 }
 0x2c2   :  { %v2399_v40 = vadd.f32 %v2398_v62, %v2266_v27 }
 0x2c3   :  { %v1918_v61 = vpop.f32.mrf.mxu0 }
 0x2c4   :  { %2437 = vst [vmem:[#allocation2 + $0xa0] sm:$0xff] %v2399_v40  ;;  %v1919_v1 = vadd.f32 %v1918_v61, %v4019_v50  ;;  %v2098_v11 = vpop.f32.mrf.mxu1  ;;  %v2269_v36 = vpop.f32.mrf.mxu2 }
 0x2c5   :  { %v2402_v25 = vpop.f32.mrf.mxu3 }
 0x2c6   :  { %v2099_v41 = vadd.f32 %v2098_v11, %v1919_v1 }
 0x2c8   :  { %v2270_v35 = vadd.f32 %v2269_v36, %v2099_v41 }
 0x2ca   :  { %v2403_v18 = vadd.f32 %v2402_v25, %v2270_v35 }
 0x2cb   :  { %v1923_v38 = vpop.f32.mrf.mxu0 }
 0x2cc   :  { %2438 = vst [vmem:[#allocation2 + $0xa8] sm:$0xff] %v2403_v18  ;;  %v1924_v30 = vadd.f32 %v1923_v38, %v4031_v28  ;;  %v2104_v45 = vpop.f32.mrf.mxu1  ;;  %v2273_v9 = vpop.f32.mrf.mxu2 }
 0x2cd   :  { %v2406_v19 = vpop.f32.mrf.mxu3 }
 0x2ce   :  { %v2105_v3 = vadd.f32 %v2104_v45, %v1924_v30 }
 0x2d0   :  { %v2274_v49 = vadd.f32 %v2273_v9, %v2105_v3 }
 0x2d2   :  { %v2407_v31 = vadd.f32 %v2406_v19, %v2274_v49 }
 0x2d3   :  { %v1928_v26 = vpop.f32.mrf.mxu0 }
 0x2d4   :  { %2439 = vst [vmem:[#allocation2 + $0xb0] sm:$0xff] %v2407_v31  ;;  %v1929_v50 = vadd.f32 %v1928_v26, %v4043_v47  ;;  %v2110_v42 = vpop.f32.mrf.mxu1  ;;  %v2277_v44 = vpop.f32.mrf.mxu2 }
 0x2d5   :  { %v2410_v7 = vpop.f32.mrf.mxu3 }
 0x2d6   :  { %v2111_v20 = vadd.f32 %v2110_v42, %v1929_v50 }
 0x2d8   :  { %v2278_v21 = vadd.f32 %v2277_v44, %v2111_v20 }
 0x2da   :  { %v2411_v52 = vadd.f32 %v2410_v7, %v2278_v21 }
 0x2db   :  { %v1933_v54 = vpop.f32.mrf.mxu0 }
 0x2dc   :  { %2440 = vst [vmem:[#allocation2 + $0xb8] sm:$0xff] %v2411_v52  ;;  %v1934_v28 = vadd.f32 %v1933_v54, %v4055_v2  ;;  %v2116_v23 = vpop.f32.mrf.mxu1  ;;  %v2281_v56 = vpop.f32.mrf.mxu2 }
 0x2dd   :  { %v2414_v14 = vpop.f32.mrf.mxu3 }
 0x2de   :  { %v2117_v0 = vadd.f32 %v2116_v23, %v1934_v28 }
 0x2e0   :  { %v2282_v47 = vadd.f32 %v2281_v56, %v2117_v0 }
 0x2e2   :  { %v2415_v39 = vadd.f32 %v2414_v14, %v2282_v47 }
 0x2e4   :  { %2441 = vst [vmem:[#allocation2 + $0xc0] sm:$0xff] %v2415_v39 }
 0x2e5   :  { %2454 = dma.vmem_to_hbm [thread:$0]  %s2447_s12, 3200, %s2449_s15, [#allocation3], %s2632_s16, %s2632_s16, %s2633_s17  }
 0x2e6   :  { %2625 = dma.done.wait [#allocation3], 3200  }
 0x2e7   :  { %2626 = vsyncadd [#allocation3], 4294964096 }
 0x2e8   :  { %2459 = vsyncpa [#allocation3], 1 }

</bundles_post_ra>
